<compile_context>
chip_gen: v5e
topology: v5e:2x2
jax: 0.10.0
libtpu: 0.0.40
codegen_flags: <defaults>
</compile_context>

<pallas_src>
import functools

import jax
import jax.numpy as jnp
from jax.experimental import pallas as pl
from jax.experimental.pallas import tpu as pltpu


def _round_up(x, m):
    return pl.cdiv(x, m) * m


def _vmem_limit_bytes():
    # Generation-aware scoped-VMEM budget: leave headroom for Mosaic internal
    # scratch / double-buffering (~48 MiB on 64-MiB chips, 100 MiB on 128-MiB).
    cap = 64 * 1024 * 1024
    try:
        info = pltpu.get_tpu_info()
        cap = int(getattr(info, "vmem_capacity_bytes", cap))
    except Exception:
        pass
    return int(min(cap - 16 * 1024 * 1024, 100 * 1024 * 1024))


def _lane_multiple(h_size):
    # v6e/v7x MXU is 256-wide; pad large hidden dims to 256 there.
    if h_size < 256:
        return 128
    try:
        kind = jax.devices()[0].device_kind.lower()
    except Exception:
        return 128
    return 256 if ("v6" in kind or "v7" in kind) else 128


# ---------------------------------------------------------------------------
# Kernel: one EncoderLayer for one batch tile; grid = (ceil(B/Bt), n_layers).
# The output block (constant index along the layer axis) is the resident
# activation buffer that carries state from layer l to layer l+1.
# ---------------------------------------------------------------------------
def encoder_stack_kernel(x_ref, mb_ref,
                         wqkv_ref, wo_ref, bo_ref, g1_ref, be1_ref,
                         w1_ref, b1_ref, w2_ref, b2_ref, g2_ref, be2_ref,
                         out_ref,
                         *, n_heads, k_size, v_size, h_real, bt, sp):
    f32 = jnp.float32
    bf16 = jnp.bfloat16
    layer = pl.program_id(1)

    # Seed the resident activation buffer at the first layer.
    @pl.when(layer == 0)
    def _():
        out_ref[...] = x_ref[...]

    Hp = out_ref.shape[-1]
    M = bt * sp
    nk = n_heads * k_size
    nv = n_heads * v_size

    x2 = out_ref[...].reshape(M, Hp)          # (M, Hp) resident f32 activation
    x_bf = x2.astype(bf16)

    # Hidden-dim validity mask (padded columns excluded from LN statistics).
    col = jax.lax.broadcasted_iota(jnp.int32, (1, Hp), 1)
    hmask = (col < h_real).astype(f32)
    inv_h = f32(1.0 / h_real)

    # ---- fused QKV projection: ONE lane-dense 2-D MXU matmul ---------------
    # wqkv columns = [q (nh*k, pre-scaled by 1/sqrt(k)) | k (nh*k) | v (nh*v)]
    qkv = jnp.dot(x_bf, wqkv_ref[0], preferred_element_type=f32)   # (M, Cqp)

    def split_heads(z2d, hd):
        # (M, n_heads*hd) -> (n_heads*bt, sp, hd); group g = h*bt + b.
        pieces = [z2d[:, h * hd:(h + 1) * hd].reshape(bt, sp, hd)
                  for h in range(n_heads)]
        return jnp.concatenate(pieces, axis=0)

    qh = split_heads(qkv[:, 0:nk], k_size).astype(bf16)            # (G, sp, k)
    kh = split_heads(qkv[:, nk:2 * nk], k_size).astype(bf16)
    vh = split_heads(qkv[:, 2 * nk:2 * nk + nv], v_size).astype(bf16)

    # ---- scores + masked softmax (f32) -------------------------------------
    s = jnp.einsum('gsk,gtk->gst', qh, kh,
                   preferred_element_type=f32)                     # (G, sp, sp)
    mb = mb_ref[...]                                               # (bt, 1, sp)
    mb_g = jnp.broadcast_to(mb[None], (n_heads, bt, 1, sp)
                            ).reshape(n_heads * bt, 1, sp)
    s = s + mb_g
    s = s - jnp.max(s, axis=-1, keepdims=True)
    p = jnp.exp(s)
    p = p * pl.reciprocal(jnp.sum(p, axis=-1, keepdims=True), approx=True)
    # TODO(synk): flash-style key tiling for very long sequences (Sp >~ 1k on
    # 64-MiB-VMEM chips) not implemented; scores are materialized per tile.

    ctx = jnp.einsum('gst,gtv->gsv', p.astype(bf16), vh,
                     preferred_element_type=f32)                   # (G, sp, v)

    # ---- output projection: per-head dot accumulated into one (M, Hp) slab -
    wo = wo_ref[0]                                                 # (nh, v, Hp)
    attn_out = jnp.zeros((M, Hp), f32)
    for h in range(n_heads):
        ctx_h = ctx[h * bt:(h + 1) * bt].reshape(M, v_size).astype(bf16)
        attn_out = attn_out + jnp.dot(ctx_h, wo[h],
                                      preferred_element_type=f32)
    attn_out = attn_out + bo_ref[0]                                # (1, Hp)

    # ---- residual + LayerNorm 1 (two-pass, f32, real-H statistics) ---------
    y = attn_out + x2
    mu = jnp.sum(y, axis=-1, keepdims=True) * inv_h
    d = (y - mu) * hmask
    var = jnp.sum(d * d, axis=-1, keepdims=True) * inv_h
    y1 = d * jax.lax.rsqrt(var + f32(1e-5)) * g1_ref[0] + be1_ref[0]

    # ---- position-wise FFN: H -> 4H (ReLU) -> H -----------------------------
    h1 = jnp.dot(y1.astype(bf16), w1_ref[0],
                 preferred_element_type=f32) + b1_ref[0]
    h1 = jnp.maximum(h1, 0.0).astype(bf16)
    ff = jnp.dot(h1, w2_ref[0], preferred_element_type=f32) + b2_ref[0]

    # ---- residual + LayerNorm 2 ---------------------------------------------
    z = ff + y1
    mu2 = jnp.sum(z, axis=-1, keepdims=True) * inv_h
    d2 = (z - mu2) * hmask
    var2 = jnp.sum(d2 * d2, axis=-1, keepdims=True) * inv_h
    z2 = d2 * jax.lax.rsqrt(var2 + f32(1e-5)) * g2_ref[0] + be2_ref[0]

    out_ref[...] = z2.reshape(bt, sp, Hp)
    # TODO(synk): dropout (attention / FFN) skipped -> eval-mode identity.


# ---------------------------------------------------------------------------
# One-time parameter preparation (hoisted off the per-forward hot path):
# pad to lane-dense shapes, fuse QKV, fold 1/sqrt(k), stack layers, cast bf16.
# ---------------------------------------------------------------------------
def prepare_encoder_params(layers_params, *, n_heads, k_size, v_size, h_size):
    bf16, f32 = jnp.bfloat16, jnp.float32
    H = h_size
    lane = _lane_multiple(H)
    Hp = _round_up(H, lane)
    F = 4 * H
    Fp = _round_up(F, lane)
    Cq = n_heads * (2 * k_size + v_size)
    Cqp = _round_up(Cq, 128)
    scale = 1.0 / (k_size ** 0.5)

    cols = {k: [] for k in ('wqkv', 'wo', 'bo', 'g1', 'be1',
                            'w1', 'b1', 'w2', 'b2', 'g2', 'be2')}
    for (wq, wk, wv, wo, bo, g1, be1, w1, b1, w2, b2, g2, be2) in layers_params:
        wqkv = jnp.concatenate([wq * scale, wk, wv], axis=1)       # (H, Cq)
        cols['wqkv'].append(jnp.pad(wqkv, ((0, Hp - H), (0, Cqp - Cq))))
        cols['wo'].append(jnp.pad(wo, ((0, 0), (0, Hp - H)))
                          .reshape(n_heads, v_size, Hp))
        cols['bo'].append(jnp.pad(bo, (0, Hp - H))[None, :])
        cols['g1'].append(jnp.pad(g1, (0, Hp - H))[None, :])
        cols['be1'].append(jnp.pad(be1, (0, Hp - H))[None, :])
        cols['w1'].append(jnp.pad(w1, ((0, Hp - H), (0, Fp - F))))
        cols['b1'].append(jnp.pad(b1, (0, Fp - F))[None, :])
        cols['w2'].append(jnp.pad(w2, ((0, Fp - F), (0, Hp - H))))
        cols['b2'].append(jnp.pad(b2, (0, Hp - H))[None, :])
        cols['g2'].append(jnp.pad(g2, (0, Hp - H))[None, :])
        cols['be2'].append(jnp.pad(be2, (0, Hp - H))[None, :])

    def stk(name, dt):
        return jnp.stack(cols[name]).astype(dt)

    # matmul weights in bf16 (MXU-native), biases / LN params in f32
    return dict(
        wqkv=stk('wqkv', bf16), wo=stk('wo', bf16), bo=stk('bo', f32),
        g1=stk('g1', f32), be1=stk('be1', f32),
        w1=stk('w1', bf16), b1=stk('b1', f32),
        w2=stk('w2', bf16), b2=stk('b2', f32),
        g2=stk('g2', f32), be2=stk('be2', f32))


# ---------------------------------------------------------------------------
# Forward wrapper: pad activations, build specs, run one fused pallas_call.
# ---------------------------------------------------------------------------
def encoder_forward(x, params, *, n_heads, k_size, v_size):
    B, S, H = x.shape
    L, Hp = params['wqkv'].shape[0], params['wqkv'].shape[1]
    Sp = _round_up(S, 8)
    Bt = min(B, 4)                      # batch tile
    Bp = _round_up(B, Bt)
    f32 = jnp.float32

    x_p = jnp.zeros((Bp, Sp, Hp), f32).at[:B, :S, :H].set(x.astype(f32))

    # PyTorch semantics: key j is masked iff input[b, j, :].sum() == 0
    # (padded rows/cols are zero, so computing it on the padded slab matches
    #  and also masks the padded key positions).
    key_is_pad = jnp.sum(x_p, axis=2) == 0                         # (Bp, Sp)
    mask_bias = jnp.where(key_is_pad, f32(-1e9), f32(0.0))[:, None, :]

    kernel = functools.partial(encoder_stack_kernel,
                               n_heads=n_heads, k_size=k_size, v_size=v_size,
                               h_real=H, bt=Bt, sp=Sp)

    w_order = ('wqkv', 'wo', 'bo', 'g1', 'be1',
               'w1', 'b1', 'w2', 'b2', 'g2', 'be2')
    weights = [params[k] for k in w_order]

    def layer_spec(arr):
        nd = arr.ndim
        return pl.BlockSpec((1,) + arr.shape[1:],
                            lambda b, l, _nd=nd: (l,) + (0,) * (_nd - 1))

    in_specs = [pl.BlockSpec((Bt, Sp, Hp), lambda b, l: (b, 0, 0)),   # x
                pl.BlockSpec((Bt, 1, Sp), lambda b, l: (b, 0, 0))]    # mask
    in_specs += [layer_spec(w) for w in weights]
    out_spec = pl.BlockSpec((Bt, Sp, Hp), lambda b, l: (b, 0, 0))

    out_p = pl.pallas_call(
        kernel,
        out_shape=jax.ShapeDtypeStruct((Bp, Sp, Hp), f32),
        grid=(Bp // Bt, L),
        in_specs=in_specs,
        out_specs=out_spec,
        compiler_params=pltpu.CompilerParams(
            dimension_semantics=("parallel", "arbitrary"),
            vmem_limit_bytes=_vmem_limit_bytes()),
    )(x_p, mask_bias, *weights)

    return out_p[:B, :S, :H]


# ---------------------------------------------------------------------------
# Pure-JAX f32 reference (mirrors the PyTorch module, eval mode).
# ---------------------------------------------------------------------------
def _layernorm(y, g, b, eps=1e-5):
    mu = jnp.mean(y, axis=-1, keepdims=True)
    var = jnp.mean((y - mu) ** 2, axis=-1, keepdims=True)
    return (y - mu) * jax.lax.rsqrt(var + eps) * g + b


def encoder_reference(x, layers_params, *, n_heads, k_size, v_size):
    B, S, H = x.shape
    key_mask = jnp.sum(x, axis=2) == 0                    # (B, S)
    out = x
    for (wq, wk, wv, wo, bo, g1, be1, w1, b1, w2, b2, g2, be2) in layers_params:
        q = out @ wq
        k = out @ wk
        v = out @ wv
        qh = q.reshape(B, S, n_heads, k_size).transpose(0, 2, 1, 3)
        kh = k.reshape(B, S, n_heads, k_size).transpose(0, 2, 1, 3)
        vh = v.reshape(B, S, n_heads, v_size).transpose(0, 2, 1, 3)
        s = jnp.einsum('bhsk,bhtk->bhst', qh, kh) / (k_size ** 0.5)
        s = jnp.where(key_mask[:, None, None, :], -1e9, s)
        p = jax.nn.softmax(s, axis=-1)
        ctx = jnp.einsum('bhst,bhtv->bhsv', p, vh)
        ctx = ctx.transpose(0, 2, 1, 3).reshape(B, S, n_heads * v_size)
        attn_out = ctx @ wo + bo
        y = _layernorm(attn_out + out, g1, be1)
        h1 = jnp.maximum(y @ w1 + b1, 0.0)
        ff = h1 @ w2 + b2
        out = _layernorm(ff + y, g2, be2)
    return out


# ---------------------------------------------------------------------------
# Deterministic parameter construction (natural PyTorch-like shapes, f32).
# ---------------------------------------------------------------------------
def init_layer_params(key, h_size, n_heads, k_size, v_size):
    ks = jax.random.split(key, 6)
    scale = 0.02
    f = jnp.float32
    wq = scale * jax.random.normal(ks[0], (h_size, n_heads * k_size), f)
    wk = scale * jax.random.normal(ks[1], (h_size, n_heads * k_size), f)
    wv = scale * jax.random.normal(ks[2], (h_size, n_heads * v_size), f)
    wo = scale * jax.random.normal(ks[3], (n_heads * v_size, h_size), f)
    bo = jnp.zeros((h_size,), f)
    g1 = jnp.ones((h_size,), f)
    be1 = jnp.zeros((h_size,), f)
    w1 = scale * jax.random.normal(ks[4], (h_size, 4 * h_size), f)
    b1 = jnp.zeros((4 * h_size,), f)
    w2 = scale * jax.random.normal(ks[5], (4 * h_size, h_size), f)
    b2 = jnp.zeros((h_size,), f)
    g2 = jnp.ones((h_size,), f)
    be2 = jnp.zeros((h_size,), f)
    return (wq, wk, wv, wo, bo, g1, be1, w1, b1, w2, b2, g2, be2)


if __name__ == "__main__":
    n_layers, n_heads = 2, 4
    h_size, k_size, v_size = 32, 8, 8
    B, S = 2, 8

    key = jax.random.PRNGKey(0)
    key_x, key_p = jax.random.split(key)
    x = jax.random.normal(key_x, (B, S, h_size), jnp.float32)
    x = x.at[1, 5, :].set(0.0)   # one all-zero position -> exercises key masking

    layer_keys = jax.random.split(key_p, n_layers)
    layers_params = [init_layer_params(k, h_size, n_heads, k_size, v_size)
                     for k in layer_keys]

    # One-time parameter layout / padding / bf16 cast (hoisted off hot path).
    params = prepare_encoder_params(layers_params, n_heads=n_heads,
                                    k_size=k_size, v_size=v_size,
                                    h_size=h_size)

    fwd = jax.jit(functools.partial(encoder_forward, n_heads=n_heads,
                                    k_size=k_size, v_size=v_size))
    out = fwd(x, params)
    out = jax.block_until_ready(out)

    ref = encoder_reference(x, layers_params,
                            n_heads=n_heads, k_size=k_size, v_size=v_size)

    assert out.shape == (B, S, h_size)
    assert bool(jnp.all(jnp.isfinite(out)))
    max_err = float(jnp.max(jnp.abs(out - ref)))
    assert max_err < 5e-2, f"max abs error vs reference: {max_err}"
    print("KERNEL_OK")
</pallas_src>

<mosaic_0001>
module attributes {stable_mosaic.version = 11 : i64} {
  func.func @encoder_stack_kernel(%arg0: i32, %arg1: i32, %arg2: memref<2x8x128xf32, #tpu.memory_space<vmem>>, %arg3: memref<2x1x8xf32, #tpu.memory_space<vmem>>, %arg4: memref<1x128x128xbf16, #tpu.memory_space<vmem>>, %arg5: memref<1x4x8x128xbf16, #tpu.memory_space<vmem>>, %arg6: memref<1x1x128xf32, #tpu.memory_space<vmem>>, %arg7: memref<1x1x128xf32, #tpu.memory_space<vmem>>, %arg8: memref<1x1x128xf32, #tpu.memory_space<vmem>>, %arg9: memref<1x128x128xbf16, #tpu.memory_space<vmem>>, %arg10: memref<1x1x128xf32, #tpu.memory_space<vmem>>, %arg11: memref<1x128x128xbf16, #tpu.memory_space<vmem>>, %arg12: memref<1x1x128xf32, #tpu.memory_space<vmem>>, %arg13: memref<1x1x128xf32, #tpu.memory_space<vmem>>, %arg14: memref<1x1x128xf32, #tpu.memory_space<vmem>>, %arg15: memref<2x8x128xf32, #tpu.memory_space<vmem>>) attributes {dimension_semantics = [#tpu.dimension_semantics<parallel>, #tpu.dimension_semantics<arbitrary>], iteration_bounds = array<i64: 1, 2>, scalar_prefetch = 0 : i64, scratch_operands = 0 : i64, tpu.core_type = #tpu.core_type<tc>, window_params = [{transform_indices = @transform_0, window_bounds = array<i64: 2, 8, 128>}, {transform_indices = @transform_1, window_bounds = array<i64: 2, 1, 8>}, {transform_indices = @transform_2, window_bounds = array<i64: 1, 128, 128>}, {transform_indices = @transform_3, window_bounds = array<i64: 1, 4, 8, 128>}, {transform_indices = @transform_4, window_bounds = array<i64: 1, 1, 128>}, {transform_indices = @transform_5, window_bounds = array<i64: 1, 1, 128>}, {transform_indices = @transform_6, window_bounds = array<i64: 1, 1, 128>}, {transform_indices = @transform_7, window_bounds = array<i64: 1, 128, 128>}, {transform_indices = @transform_8, window_bounds = array<i64: 1, 1, 128>}, {transform_indices = @transform_9, window_bounds = array<i64: 1, 128, 128>}, {transform_indices = @transform_10, window_bounds = array<i64: 1, 1, 128>}, {transform_indices = @transform_11, window_bounds = array<i64: 1, 1, 128>}, {transform_indices = @transform_12, window_bounds = array<i64: 1, 1, 128>}, {transform_indices = @transform_13, window_bounds = array<i64: 2, 8, 128>}]} {
    %c0_i32 = arith.constant 0 : i32
    %0 = arith.cmpi eq, %arg1, %c0_i32 : i32
    %1 = arith.extui %0 : i1 to i32
    %c0_i32_0 = arith.constant 0 : i32
    %2 = arith.cmpi ne, %1, %c0_i32_0 : i32
    scf.if %2 {
      %c0_65 = arith.constant 0 : index
      %c0_66 = arith.constant 0 : index
      %c0_67 = arith.constant 0 : index
      %176 = vector.load %arg2[%c0_65, %c0_66, %c0_67] : memref<2x8x128xf32, #tpu.memory_space<vmem>>, vector<2x8x128xf32>
      %c0_68 = arith.constant 0 : index
      %c0_69 = arith.constant 0 : index
      %c0_70 = arith.constant 0 : index
      %177 = vector.load %arg15[%c0_68, %c0_69, %c0_70] : memref<2x8x128xf32, #tpu.memory_space<vmem>>, vector<2x8x128xf32>
      tpu.vector_store %arg15[%c0_68, %c0_69, %c0_70], %176 {strides = array<i32>} : memref<2x8x128xf32, #tpu.memory_space<vmem>>, vector<2x8x128xf32>,
    } else {
    }
    %c0 = arith.constant 0 : index
    %c0_1 = arith.constant 0 : index
    %c0_2 = arith.constant 0 : index
    %3 = vector.load %arg15[%c0, %c0_1, %c0_2] : memref<2x8x128xf32, #tpu.memory_space<vmem>>, vector<2x8x128xf32>
    %4 = vector.shape_cast %3 : vector<2x8x128xf32> to vector<16x128xf32>
    %5 = arith.truncf %4 : vector<16x128xf32> to vector<16x128xbf16>
    %6 = tpu.iota {dimensions = array<i32: 1>} : vector<1x128xi32>
    %c32_i32 = arith.constant 32 : i32
    %7 = vector.broadcast %c32_i32 : i32 to vector<1x128xi32>
    %8 = arith.cmpi slt, %6, %7 : vector<1x128xi32>
    %9 = arith.extui %8 : vector<1x128xi1> to vector<1x128xi32>
    %10 = arith.sitofp %9 : vector<1x128xi32> to vector<1x128xf32>
    %c0_3 = arith.constant 0 : index
    %c0_4 = arith.constant 0 : index
    %c0_5 = arith.constant 0 : index
    %11 = vector.load %arg4[%c0_3, %c0_4, %c0_5] : memref<1x128x128xbf16, #tpu.memory_space<vmem>>, vector<1x128x128xbf16>
    %12 = vector.shape_cast %11 : vector<1x128x128xbf16> to vector<128x128xbf16>
    %cst = arith.constant dense<0.000000e+00> : vector<16x128xf32>
    %13 = tpu.matmul %5, %12, %cst {dimension_numbers = #tpu.dot_dimension_numbers<[1], [0], [0], [1], [0, 0, 1, 1], [], []>} : vector<16x128xbf16>, vector<128x128xbf16>, vector<16x128xf32> -> vector<16x128xf32>
    %14 = vector.extract_strided_slice %13 {offsets = [0, 0], sizes = [16, 32], strides = [1, 1]} : vector<16x128xf32> to vector<16x32xf32>
    %15 = vector.extract_strided_slice %14 {offsets = [0, 0], sizes = [16, 8], strides = [1, 1]} : vector<16x32xf32> to vector<16x8xf32>
    %16 = vector.shape_cast %15 : vector<16x8xf32> to vector<2x8x8xf32>
    %17 = vector.extract_strided_slice %14 {offsets = [0, 8], sizes = [16, 8], strides = [1, 1]} : vector<16x32xf32> to vector<16x8xf32>
    %18 = vector.shape_cast %17 : vector<16x8xf32> to vector<2x8x8xf32>
    %19 = vector.extract_strided_slice %14 {offsets = [0, 16], sizes = [16, 8], strides = [1, 1]} : vector<16x32xf32> to vector<16x8xf32>
    %20 = vector.shape_cast %19 : vector<16x8xf32> to vector<2x8x8xf32>
    %21 = vector.extract_strided_slice %14 {offsets = [0, 24], sizes = [16, 8], strides = [1, 1]} : vector<16x32xf32> to vector<16x8xf32>
    %22 = vector.shape_cast %21 : vector<16x8xf32> to vector<2x8x8xf32>
    %23 = tpu.concatenate %16, %18, %20, %22 in 0 : vector<2x8x8xf32>, vector<2x8x8xf32>, vector<2x8x8xf32>, vector<2x8x8xf32> -> vector<8x8x8xf32>
    %24 = arith.truncf %23 : vector<8x8x8xf32> to vector<8x8x8xbf16>
    %25 = vector.extract_strided_slice %13 {offsets = [0, 32], sizes = [16, 32], strides = [1, 1]} : vector<16x128xf32> to vector<16x32xf32>
    %26 = vector.extract_strided_slice %25 {offsets = [0, 0], sizes = [16, 8], strides = [1, 1]} : vector<16x32xf32> to vector<16x8xf32>
    %27 = vector.shape_cast %26 : vector<16x8xf32> to vector<2x8x8xf32>
    %28 = vector.extract_strided_slice %25 {offsets = [0, 8], sizes = [16, 8], strides = [1, 1]} : vector<16x32xf32> to vector<16x8xf32>
    %29 = vector.shape_cast %28 : vector<16x8xf32> to vector<2x8x8xf32>
    %30 = vector.extract_strided_slice %25 {offsets = [0, 16], sizes = [16, 8], strides = [1, 1]} : vector<16x32xf32> to vector<16x8xf32>
    %31 = vector.shape_cast %30 : vector<16x8xf32> to vector<2x8x8xf32>
    %32 = vector.extract_strided_slice %25 {offsets = [0, 24], sizes = [16, 8], strides = [1, 1]} : vector<16x32xf32> to vector<16x8xf32>
    %33 = vector.shape_cast %32 : vector<16x8xf32> to vector<2x8x8xf32>
    %34 = tpu.concatenate %27, %29, %31, %33 in 0 : vector<2x8x8xf32>, vector<2x8x8xf32>, vector<2x8x8xf32>, vector<2x8x8xf32> -> vector<8x8x8xf32>
    %35 = arith.truncf %34 : vector<8x8x8xf32> to vector<8x8x8xbf16>
    %36 = vector.extract_strided_slice %13 {offsets = [0, 64], sizes = [16, 32], strides = [1, 1]} : vector<16x128xf32> to vector<16x32xf32>
    %37 = vector.extract_strided_slice %36 {offsets = [0, 0], sizes = [16, 8], strides = [1, 1]} : vector<16x32xf32> to vector<16x8xf32>
    %38 = vector.shape_cast %37 : vector<16x8xf32> to vector<2x8x8xf32>
    %39 = vector.extract_strided_slice %36 {offsets = [0, 8], sizes = [16, 8], strides = [1, 1]} : vector<16x32xf32> to vector<16x8xf32>
    %40 = vector.shape_cast %39 : vector<16x8xf32> to vector<2x8x8xf32>
    %41 = vector.extract_strided_slice %36 {offsets = [0, 16], sizes = [16, 8], strides = [1, 1]} : vector<16x32xf32> to vector<16x8xf32>
    %42 = vector.shape_cast %41 : vector<16x8xf32> to vector<2x8x8xf32>
    %43 = vector.extract_strided_slice %36 {offsets = [0, 24], sizes = [16, 8], strides = [1, 1]} : vector<16x32xf32> to vector<16x8xf32>
    %44 = vector.shape_cast %43 : vector<16x8xf32> to vector<2x8x8xf32>
    %45 = tpu.concatenate %38, %40, %42, %44 in 0 : vector<2x8x8xf32>, vector<2x8x8xf32>, vector<2x8x8xf32>, vector<2x8x8xf32> -> vector<8x8x8xf32>
    %46 = arith.truncf %45 : vector<8x8x8xf32> to vector<8x8x8xbf16>
    "tpu.trace_start"() <{level = 10 : i32, message = "gsk,gtk->gst"}> : () -> ()
    %cst_6 = arith.constant dense<0.000000e+00> : vector<8x8x8xf32>
    %47 = tpu.matmul %24, %35, %cst_6 {dimension_numbers = #tpu.dot_dimension_numbers<[2], [2], [1], [1], [0, 0, 0, 1, 1, 1], [0], [0]>} : vector<8x8x8xbf16>, vector<8x8x8xbf16>, vector<8x8x8xf32> -> vector<8x8x8xf32>
    "tpu.trace_stop"() : () -> ()
    %c0_7 = arith.constant 0 : index
    %c0_8 = arith.constant 0 : index
    %c0_9 = arith.constant 0 : index
    %48 = vector.load %arg3[%c0_7, %c0_8, %c0_9] : memref<2x1x8xf32, #tpu.memory_space<vmem>>, vector<2x1x8xf32>
    %49 = vector.shape_cast %48 : vector<2x1x8xf32> to vector<1x2x1x8xf32>
    %50 = vector.shape_cast %49 : vector<1x2x1x8xf32> to vector<1x2x1x8xf32>
    %51 = vector.broadcast %50 : vector<1x2x1x8xf32> to vector<4x2x1x8xf32>
    %52 = vector.shape_cast %51 : vector<4x2x1x8xf32> to vector<8x1x8xf32>
    %53 = vector.broadcast %52 : vector<8x1x8xf32> to vector<8x8x8xf32>
    %54 = arith.addf %47, %53 : vector<8x8x8xf32>
    %cst_10 = arith.constant dense<0xFF800000> : vector<8x8xf32>
    %55 = vector.multi_reduction <maximumf>, %54, %cst_10 [2] : vector<8x8x8xf32> to vector<8x8xf32>
    %56 = vector.shape_cast %55 : vector<8x8xf32> to vector<8x8x1xf32>
    %57 = vector.broadcast %56 : vector<8x8x1xf32> to vector<8x8x8xf32>
    %58 = arith.subf %54, %57 : vector<8x8x8xf32>
    %59 = math.exp %58 : vector<8x8x8xf32>
    %cst_11 = arith.constant dense<0.000000e+00> : vector<8x8xf32>
    %60 = vector.multi_reduction <add>, %59, %cst_11 [2] : vector<8x8x8xf32> to vector<8x8xf32>
    %61 = vector.shape_cast %60 : vector<8x8xf32> to vector<8x8x1xf32>
    %62 = tpu.reciprocal %61 {approx = true} : vector<8x8x1xf32> -> vector<8x8x1xf32>
    %63 = vector.broadcast %62 : vector<8x8x1xf32> to vector<8x8x8xf32>
    %64 = arith.mulf %59, %63 : vector<8x8x8xf32>
    %65 = arith.truncf %64 : vector<8x8x8xf32> to vector<8x8x8xbf16>
    "tpu.trace_start"() <{level = 10 : i32, message = "gst,gtv->gsv"}> : () -> ()
    %cst_12 = arith.constant dense<0.000000e+00> : vector<8x8x8xf32>
    %66 = tpu.matmul %65, %46, %cst_12 {dimension_numbers = #tpu.dot_dimension_numbers<[2], [1], [1], [2], [0, 0, 0, 1, 1, 2], [0], [0]>} : vector<8x8x8xbf16>, vector<8x8x8xbf16>, vector<8x8x8xf32> -> vector<8x8x8xf32>
    "tpu.trace_stop"() : () -> ()
    %c0_13 = arith.constant 0 : index
    %c0_14 = arith.constant 0 : index
    %c0_15 = arith.constant 0 : index
    %c0_16 = arith.constant 0 : index
    %67 = vector.load %arg5[%c0_13, %c0_14, %c0_15, %c0_16] : memref<1x4x8x128xbf16, #tpu.memory_space<vmem>>, vector<1x4x8x128xbf16>
    %68 = vector.shape_cast %67 : vector<1x4x8x128xbf16> to vector<4x8x128xbf16>
    %cst_17 = arith.constant 0.000000e+00 : f32
    %69 = vector.broadcast %cst_17 : f32 to vector<16x128xf32>
    %70 = vector.extract_strided_slice %66 {offsets = [0, 0, 0], sizes = [2, 8, 8], strides = [1, 1, 1]} : vector<8x8x8xf32> to vector<2x8x8xf32>
    %71 = vector.shape_cast %70 : vector<2x8x8xf32> to vector<16x8xf32>
    %72 = arith.truncf %71 : vector<16x8xf32> to vector<16x8xbf16>
    %73 = vector.extract_strided_slice %68 {offsets = [0, 0, 0], sizes = [1, 8, 128], strides = [1, 1, 1]} : vector<4x8x128xbf16> to vector<1x8x128xbf16>
    %74 = vector.shape_cast %73 : vector<1x8x128xbf16> to vector<8x128xbf16>
    %cst_18 = arith.constant dense<0.000000e+00> : vector<16x128xf32>
    %75 = tpu.matmul %72, %74, %cst_18 {dimension_numbers = #tpu.dot_dimension_numbers<[1], [0], [0], [1], [0, 0, 1, 1], [], []>} : vector<16x8xbf16>, vector<8x128xbf16>, vector<16x128xf32> -> vector<16x128xf32>
    %76 = arith.addf %69, %75 : vector<16x128xf32>
    %77 = vector.extract_strided_slice %66 {offsets = [2, 0, 0], sizes = [2, 8, 8], strides = [1, 1, 1]} : vector<8x8x8xf32> to vector<2x8x8xf32>
    %78 = vector.shape_cast %77 : vector<2x8x8xf32> to vector<16x8xf32>
    %79 = arith.truncf %78 : vector<16x8xf32> to vector<16x8xbf16>
    %80 = vector.extract_strided_slice %68 {offsets = [1, 0, 0], sizes = [1, 8, 128], strides = [1, 1, 1]} : vector<4x8x128xbf16> to vector<1x8x128xbf16>
    %81 = vector.shape_cast %80 : vector<1x8x128xbf16> to vector<8x128xbf16>
    %cst_19 = arith.constant dense<0.000000e+00> : vector<16x128xf32>
    %82 = tpu.matmul %79, %81, %cst_19 {dimension_numbers = #tpu.dot_dimension_numbers<[1], [0], [0], [1], [0, 0, 1, 1], [], []>} : vector<16x8xbf16>, vector<8x128xbf16>, vector<16x128xf32> -> vector<16x128xf32>
    %83 = arith.addf %76, %82 : vector<16x128xf32>
    %84 = vector.extract_strided_slice %66 {offsets = [4, 0, 0], sizes = [2, 8, 8], strides = [1, 1, 1]} : vector<8x8x8xf32> to vector<2x8x8xf32>
    %85 = vector.shape_cast %84 : vector<2x8x8xf32> to vector<16x8xf32>
    %86 = arith.truncf %85 : vector<16x8xf32> to vector<16x8xbf16>
    %87 = vector.extract_strided_slice %68 {offsets = [2, 0, 0], sizes = [1, 8, 128], strides = [1, 1, 1]} : vector<4x8x128xbf16> to vector<1x8x128xbf16>
    %88 = vector.shape_cast %87 : vector<1x8x128xbf16> to vector<8x128xbf16>
    %cst_20 = arith.constant dense<0.000000e+00> : vector<16x128xf32>
    %89 = tpu.matmul %86, %88, %cst_20 {dimension_numbers = #tpu.dot_dimension_numbers<[1], [0], [0], [1], [0, 0, 1, 1], [], []>} : vector<16x8xbf16>, vector<8x128xbf16>, vector<16x128xf32> -> vector<16x128xf32>
    %90 = arith.addf %83, %89 : vector<16x128xf32>
    %91 = vector.extract_strided_slice %66 {offsets = [6, 0, 0], sizes = [2, 8, 8], strides = [1, 1, 1]} : vector<8x8x8xf32> to vector<2x8x8xf32>
    %92 = vector.shape_cast %91 : vector<2x8x8xf32> to vector<16x8xf32>
    %93 = arith.truncf %92 : vector<16x8xf32> to vector<16x8xbf16>
    %94 = vector.extract_strided_slice %68 {offsets = [3, 0, 0], sizes = [1, 8, 128], strides = [1, 1, 1]} : vector<4x8x128xbf16> to vector<1x8x128xbf16>
    %95 = vector.shape_cast %94 : vector<1x8x128xbf16> to vector<8x128xbf16>
    %cst_21 = arith.constant dense<0.000000e+00> : vector<16x128xf32>
    %96 = tpu.matmul %93, %95, %cst_21 {dimension_numbers = #tpu.dot_dimension_numbers<[1], [0], [0], [1], [0, 0, 1, 1], [], []>} : vector<16x8xbf16>, vector<8x128xbf16>, vector<16x128xf32> -> vector<16x128xf32>
    %97 = arith.addf %90, %96 : vector<16x128xf32>
    %c0_22 = arith.constant 0 : index
    %c0_23 = arith.constant 0 : index
    %c0_24 = arith.constant 0 : index
    %98 = vector.load %arg6[%c0_22, %c0_23, %c0_24] : memref<1x1x128xf32, #tpu.memory_space<vmem>>, vector<1x1x128xf32>
    %99 = vector.shape_cast %98 : vector<1x1x128xf32> to vector<1x128xf32>
    %100 = vector.broadcast %99 : vector<1x128xf32> to vector<16x128xf32>
    %101 = arith.addf %97, %100 : vector<16x128xf32>
    %102 = arith.addf %101, %4 : vector<16x128xf32>
    %cst_25 = arith.constant dense<0.000000e+00> : vector<16xf32>
    %103 = vector.multi_reduction <add>, %102, %cst_25 [1] : vector<16x128xf32> to vector<16xf32>
    %104 = vector.shape_cast %103 : vector<16xf32> to vector<16x1xf32>
    %cst_26 = arith.constant 3.125000e-02 : f32
    %105 = vector.broadcast %cst_26 : f32 to vector<16x1xf32>
    %106 = arith.mulf %104, %105 : vector<16x1xf32>
    %107 = vector.broadcast %106 : vector<16x1xf32> to vector<16x128xf32>
    %108 = arith.subf %102, %107 : vector<16x128xf32>
    %109 = vector.broadcast %10 : vector<1x128xf32> to vector<16x128xf32>
    %110 = arith.mulf %108, %109 : vector<16x128xf32>
    %111 = arith.mulf %110, %110 : vector<16x128xf32>
    %cst_27 = arith.constant dense<0.000000e+00> : vector<16xf32>
    %112 = vector.multi_reduction <add>, %111, %cst_27 [1] : vector<16x128xf32> to vector<16xf32>
    %113 = vector.shape_cast %112 : vector<16xf32> to vector<16x1xf32>
    %cst_28 = arith.constant 3.125000e-02 : f32
    %114 = vector.broadcast %cst_28 : f32 to vector<16x1xf32>
    %115 = arith.mulf %113, %114 : vector<16x1xf32>
    %cst_29 = arith.constant 9.99999974E-6 : f32
    %116 = vector.broadcast %cst_29 : f32 to vector<16x1xf32>
    %117 = arith.addf %115, %116 : vector<16x1xf32>
    %118 = math.rsqrt %117 : vector<16x1xf32>
    %119 = vector.broadcast %118 : vector<16x1xf32> to vector<16x128xf32>
    %120 = arith.mulf %110, %119 : vector<16x128xf32>
    %c0_30 = arith.constant 0 : index
    %c0_31 = arith.constant 0 : index
    %c0_32 = arith.constant 0 : index
    %121 = vector.load %arg7[%c0_30, %c0_31, %c0_32] : memref<1x1x128xf32, #tpu.memory_space<vmem>>, vector<1x1x128xf32>
    %122 = vector.shape_cast %121 : vector<1x1x128xf32> to vector<1x128xf32>
    %123 = vector.broadcast %122 : vector<1x128xf32> to vector<16x128xf32>
    %124 = arith.mulf %120, %123 : vector<16x128xf32>
    %c0_33 = arith.constant 0 : index
    %c0_34 = arith.constant 0 : index
    %c0_35 = arith.constant 0 : index
    %125 = vector.load %arg8[%c0_33, %c0_34, %c0_35] : memref<1x1x128xf32, #tpu.memory_space<vmem>>, vector<1x1x128xf32>
    %126 = vector.shape_cast %125 : vector<1x1x128xf32> to vector<1x128xf32>
    %127 = vector.broadcast %126 : vector<1x128xf32> to vector<16x128xf32>
    %128 = arith.addf %124, %127 : vector<16x128xf32>
    %129 = arith.truncf %128 : vector<16x128xf32> to vector<16x128xbf16>
    %c0_36 = arith.constant 0 : index
    %c0_37 = arith.constant 0 : index
    %c0_38 = arith.constant 0 : index
    %130 = vector.load %arg9[%c0_36, %c0_37, %c0_38] : memref<1x128x128xbf16, #tpu.memory_space<vmem>>, vector<1x128x128xbf16>
    %131 = vector.shape_cast %130 : vector<1x128x128xbf16> to vector<128x128xbf16>
    %cst_39 = arith.constant dense<0.000000e+00> : vector<16x128xf32>
    %132 = tpu.matmul %129, %131, %cst_39 {dimension_numbers = #tpu.dot_dimension_numbers<[1], [0], [0], [1], [0, 0, 1, 1], [], []>} : vector<16x128xbf16>, vector<128x128xbf16>, vector<16x128xf32> -> vector<16x128xf32>
    %c0_40 = arith.constant 0 : index
    %c0_41 = arith.constant 0 : index
    %c0_42 = arith.constant 0 : index
    %133 = vector.load %arg10[%c0_40, %c0_41, %c0_42] : memref<1x1x128xf32, #tpu.memory_space<vmem>>, vector<1x1x128xf32>
    %134 = vector.shape_cast %133 : vector<1x1x128xf32> to vector<1x128xf32>
    %135 = vector.broadcast %134 : vector<1x128xf32> to vector<16x128xf32>
    %136 = arith.addf %132, %135 : vector<16x128xf32>
    %cst_43 = arith.constant 0.000000e+00 : f32
    %137 = vector.broadcast %cst_43 : f32 to vector<16x128xf32>
    %138 = arith.maximumf %136, %137 : vector<16x128xf32>
    %139 = arith.truncf %138 : vector<16x128xf32> to vector<16x128xbf16>
    %c0_44 = arith.constant 0 : index
    %c0_45 = arith.constant 0 : index
    %c0_46 = arith.constant 0 : index
    %140 = vector.load %arg11[%c0_44, %c0_45, %c0_46] : memref<1x128x128xbf16, #tpu.memory_space<vmem>>, vector<1x128x128xbf16>
    %141 = vector.shape_cast %140 : vector<1x128x128xbf16> to vector<128x128xbf16>
    %cst_47 = arith.constant dense<0.000000e+00> : vector<16x128xf32>
    %142 = tpu.matmul %139, %141, %cst_47 {dimension_numbers = #tpu.dot_dimension_numbers<[1], [0], [0], [1], [0, 0, 1, 1], [], []>} : vector<16x128xbf16>, vector<128x128xbf16>, vector<16x128xf32> -> vector<16x128xf32>
    %c0_48 = arith.constant 0 : index
    %c0_49 = arith.constant 0 : index
    %c0_50 = arith.constant 0 : index
    %143 = vector.load %arg12[%c0_48, %c0_49, %c0_50] : memref<1x1x128xf32, #tpu.memory_space<vmem>>, vector<1x1x128xf32>
    %144 = vector.shape_cast %143 : vector<1x1x128xf32> to vector<1x128xf32>
    %145 = vector.broadcast %144 : vector<1x128xf32> to vector<16x128xf32>
    %146 = arith.addf %142, %145 : vector<16x128xf32>
    %147 = arith.addf %146, %128 : vector<16x128xf32>
    %cst_51 = arith.constant dense<0.000000e+00> : vector<16xf32>
    %148 = vector.multi_reduction <add>, %147, %cst_51 [1] : vector<16x128xf32> to vector<16xf32>
    %149 = vector.shape_cast %148 : vector<16xf32> to vector<16x1xf32>
    %cst_52 = arith.constant 3.125000e-02 : f32
    %150 = vector.broadcast %cst_52 : f32 to vector<16x1xf32>
    %151 = arith.mulf %149, %150 : vector<16x1xf32>
    %152 = vector.broadcast %151 : vector<16x1xf32> to vector<16x128xf32>
    %153 = arith.subf %147, %152 : vector<16x128xf32>
    %154 = vector.broadcast %10 : vector<1x128xf32> to vector<16x128xf32>
    %155 = arith.mulf %153, %154 : vector<16x128xf32>
    %156 = arith.mulf %155, %155 : vector<16x128xf32>
    %cst_53 = arith.constant dense<0.000000e+00> : vector<16xf32>
    %157 = vector.multi_reduction <add>, %156, %cst_53 [1] : vector<16x128xf32> to vector<16xf32>
    %158 = vector.shape_cast %157 : vector<16xf32> to vector<16x1xf32>
    %cst_54 = arith.constant 3.125000e-02 : f32
    %159 = vector.broadcast %cst_54 : f32 to vector<16x1xf32>
    %160 = arith.mulf %158, %159 : vector<16x1xf32>
    %cst_55 = arith.constant 9.99999974E-6 : f32
    %161 = vector.broadcast %cst_55 : f32 to vector<16x1xf32>
    %162 = arith.addf %160, %161 : vector<16x1xf32>
    %163 = math.rsqrt %162 : vector<16x1xf32>
    %164 = vector.broadcast %163 : vector<16x1xf32> to vector<16x128xf32>
    %165 = arith.mulf %155, %164 : vector<16x128xf32>
    %c0_56 = arith.constant 0 : index
    %c0_57 = arith.constant 0 : index
    %c0_58 = arith.constant 0 : index
    %166 = vector.load %arg13[%c0_56, %c0_57, %c0_58] : memref<1x1x128xf32, #tpu.memory_space<vmem>>, vector<1x1x128xf32>
    %167 = vector.shape_cast %166 : vector<1x1x128xf32> to vector<1x128xf32>
    %168 = vector.broadcast %167 : vector<1x128xf32> to vector<16x128xf32>
    %169 = arith.mulf %165, %168 : vector<16x128xf32>
    %c0_59 = arith.constant 0 : index
    %c0_60 = arith.constant 0 : index
    %c0_61 = arith.constant 0 : index
    %170 = vector.load %arg14[%c0_59, %c0_60, %c0_61] : memref<1x1x128xf32, #tpu.memory_space<vmem>>, vector<1x1x128xf32>
    %171 = vector.shape_cast %170 : vector<1x1x128xf32> to vector<1x128xf32>
    %172 = vector.broadcast %171 : vector<1x128xf32> to vector<16x128xf32>
    %173 = arith.addf %169, %172 : vector<16x128xf32>
    %174 = vector.shape_cast %173 : vector<16x128xf32> to vector<2x8x128xf32>
    %c0_62 = arith.constant 0 : index
    %c0_63 = arith.constant 0 : index
    %c0_64 = arith.constant 0 : index
    %175 = vector.load %arg15[%c0_62, %c0_63, %c0_64] : memref<2x8x128xf32, #tpu.memory_space<vmem>>, vector<2x8x128xf32>
    tpu.vector_store %arg15[%c0_62, %c0_63, %c0_64], %174 {strides = array<i32>} : memref<2x8x128xf32, #tpu.memory_space<vmem>>, vector<2x8x128xf32>,
    return
  }
  func.func @transform_0(%arg0: i32, %arg1: i32) -> (i32, i32, i32) {
    %c0_i32 = arith.constant 0 : i32
    %c0_i32_0 = arith.constant 0 : i32
    %c0_i32_1 = arith.constant 0 : i32
    return %arg0, %c0_i32, %c0_i32_0 : i32, i32, i32
  }
  func.func @transform_1(%arg0: i32, %arg1: i32) -> (i32, i32, i32) {
    %c0_i32 = arith.constant 0 : i32
    %c0_i32_0 = arith.constant 0 : i32
    %c0_i32_1 = arith.constant 0 : i32
    return %arg0, %c0_i32, %c0_i32_0 : i32, i32, i32
  }
  func.func @transform_2(%arg0: i32, %arg1: i32) -> (i32, i32, i32) {
    %c0_i32 = arith.constant 0 : i32
    %c0_i32_0 = arith.constant 0 : i32
    %c0_i32_1 = arith.constant 0 : i32
    return %arg1, %c0_i32, %c0_i32_0 : i32, i32, i32
  }
  func.func @transform_3(%arg0: i32, %arg1: i32) -> (i32, i32, i32, i32) {
    %c0_i32 = arith.constant 0 : i32
    %c0_i32_0 = arith.constant 0 : i32
    %c0_i32_1 = arith.constant 0 : i32
    %c0_i32_2 = arith.constant 0 : i32
    return %arg1, %c0_i32, %c0_i32_0, %c0_i32_1 : i32, i32, i32, i32
  }
  func.func @transform_4(%arg0: i32, %arg1: i32) -> (i32, i32, i32) {
    %c0_i32 = arith.constant 0 : i32
    %c0_i32_0 = arith.constant 0 : i32
    %c0_i32_1 = arith.constant 0 : i32
    return %arg1, %c0_i32, %c0_i32_0 : i32, i32, i32
  }
  func.func @transform_5(%arg0: i32, %arg1: i32) -> (i32, i32, i32) {
    %c0_i32 = arith.constant 0 : i32
    %c0_i32_0 = arith.constant 0 : i32
    %c0_i32_1 = arith.constant 0 : i32
    return %arg1, %c0_i32, %c0_i32_0 : i32, i32, i32
  }
  func.func @transform_6(%arg0: i32, %arg1: i32) -> (i32, i32, i32) {
    %c0_i32 = arith.constant 0 : i32
    %c0_i32_0 = arith.constant 0 : i32
    %c0_i32_1 = arith.constant 0 : i32
    return %arg1, %c0_i32, %c0_i32_0 : i32, i32, i32
  }
  func.func @transform_7(%arg0: i32, %arg1: i32) -> (i32, i32, i32) {
    %c0_i32 = arith.constant 0 : i32
    %c0_i32_0 = arith.constant 0 : i32
    %c0_i32_1 = arith.constant 0 : i32
    return %arg1, %c0_i32, %c0_i32_0 : i32, i32, i32
  }
  func.func @transform_8(%arg0: i32, %arg1: i32) -> (i32, i32, i32) {
    %c0_i32 = arith.constant 0 : i32
    %c0_i32_0 = arith.constant 0 : i32
    %c0_i32_1 = arith.constant 0 : i32
    return %arg1, %c0_i32, %c0_i32_0 : i32, i32, i32
  }
  func.func @transform_9(%arg0: i32, %arg1: i32) -> (i32, i32, i32) {
    %c0_i32 = arith.constant 0 : i32
    %c0_i32_0 = arith.constant 0 : i32
    %c0_i32_1 = arith.constant 0 : i32
    return %arg1, %c0_i32, %c0_i32_0 : i32, i32, i32
  }
  func.func @transform_10(%arg0: i32, %arg1: i32) -> (i32, i32, i32) {
    %c0_i32 = arith.constant 0 : i32
    %c0_i32_0 = arith.constant 0 : i32
    %c0_i32_1 = arith.constant 0 : i32
    return %arg1, %c0_i32, %c0_i32_0 : i32, i32, i32
  }
  func.func @transform_11(%arg0: i32, %arg1: i32) -> (i32, i32, i32) {
    %c0_i32 = arith.constant 0 : i32
    %c0_i32_0 = arith.constant 0 : i32
    %c0_i32_1 = arith.constant 0 : i32
    return %arg1, %c0_i32, %c0_i32_0 : i32, i32, i32
  }
  func.func @transform_12(%arg0: i32, %arg1: i32) -> (i32, i32, i32) {
    %c0_i32 = arith.constant 0 : i32
    %c0_i32_0 = arith.constant 0 : i32
    %c0_i32_1 = arith.constant 0 : i32
    return %arg1, %c0_i32, %c0_i32_0 : i32, i32, i32
  }
  func.func @transform_13(%arg0: i32, %arg1: i32) -> (i32, i32, i32) {
    %c0_i32 = arith.constant 0 : i32
    %c0_i32_0 = arith.constant 0 : i32
    %c0_i32_1 = arith.constant 0 : i32
    return %arg0, %c0_i32, %c0_i32_0 : i32, i32, i32
  }
}

</mosaic_0001>

<bundles_post_ra>
// kernel: encoder_forward.1
= control target key start
LH: loop header
LB: loop body
LE: loop exit
PB: predicated region body
PF: predicated region fallthrough
CT: control target
= control target key end

     0   :  { %s2820_s0 = inlined_call_operand.vmem [shape: f32[2,8,128], index: 0, kind: input, shape index: {}]   ;;  %s2821_s1 = inlined_call_operand.vmem [shape: f32[2,1,8], index: 1, kind: input, shape index: {}]   ;;  %s2822_s2 = inlined_call_operand.hbm [shape: bf16[2,128,128], index: 2, kind: input, shape index: {}]   ;;  %s2823_s3 = inlined_call_operand.vmem [shape: bf16[2,4,8,128], index: 3, kind: input, shape index: {}]   ;;  %s2824_s4 = inlined_call_operand.vmem [shape: f32[2,1,128], index: 4, kind: input, shape index: {}]   ;;  %s2825_s5 = inlined_call_operand.vmem [shape: f32[2,1,128], index: 5, kind: input, shape index: {}]   ;;  %s2826_s6 = inlined_call_operand.vmem [shape: f32[2,1,128], index: 6, kind: input, shape index: {}]   ;;  %s2827_s7 = inlined_call_operand.hbm [shape: bf16[2,128,128], index: 7, kind: input, shape index: {}]   ;;  %s2828_s8 = inlined_call_operand.vmem [shape: f32[2,1,128], index: 8, kind: input, shape index: {}]   ;;  %s2829_s9 = inlined_call_operand.hbm [shape: bf16[2,128,128], index: 9, kind: input, shape index: {}]   ;;  %s2830_s10 = inlined_call_operand.vmem [shape: f32[2,1,128], index: 10, kind: input, shape index: {}]   ;;  %s2831_s11 = inlined_call_operand.vmem [shape: f32[2,1,128], index: 11, kind: input, shape index: {}]   ;;  %s2832_s12 = inlined_call_operand.vmem [shape: f32[2,1,128], index: 12, kind: input, shape index: {}]   ;;  %s2833_s13 = inlined_call_operand.hbm [shape: f32[2,8,128], index: 13, kind: output, shape index: {}]  }
   0x1   :  { %2840 = sst [smem:[#allocation17_spill]] %s2820_s0 }
   0x2   :  { %2841 = sst [smem:[#allocation18_spill]] %s2821_s1 }
   0x3   :  { %2842 = sst [smem:[#allocation19_spill]] %s2822_s2 }
   0x4   :  { %2843 = sst [smem:[#allocation20_spill]] %s2823_s3 }
   0x5   :  { %2844 = sst [smem:[#allocation21_spill]] %s2827_s7 }
   0x6   :  { %2845 = sst [smem:[#allocation22_spill]] %s2828_s8 }
   0x7   :  { %2846 = sst [smem:[#allocation23_spill]] %s2829_s9 }
   0x8   :  { %2847 = sst [smem:[#allocation24_spill]] %s2830_s10 }
   0x9   :  { %2848 = sst [smem:[#allocation25_spill]] %s2831_s11 }
   0xa   :  { %2849 = sst [smem:[#allocation26_spill]] %s2832_s12 }
   0xb   :  { %2850 = sst [smem:[#allocation27_spill]] %s2833_s13 }
   0xc   :  { %18 = vsyncpa [#allocation3], 0 }
   0xd   :  { %20 = vsyncpa [#allocation3 + $0x1], 0 }
   0xe   :  { %21 = vsyncpa [#allocation6], 0 }
   0xf   :  { %23 = vsyncpa [#allocation6 + $0x1], 0 }
  0x10   :  { %24 = vsyncpa [#allocation4], 0  ;;  %s2461_s25 = smov 0   ;;  %s2463_s26 = smov 0  }
  0x11   :  { %s2465_s27 = smov 0   ;;  %s2467_s28 = smov 0  }
  0x12   :  { %s2469_s29 = smov 0   ;;  %s2471_s30 = smov 0  }
  0x13 LB: > { %2851 = sst [smem:[#allocation12_spill]] %s2366_s27  ;;  %s2490_s14 = sadd.s32 4294967295, %s2378_s30   ;;  %s2378_s30 = sphi %s2471_s30, %s30_s30   ;;  %s2374_s29 = sphi %s2469_s29, %s2880_s29   ;;  %s2370_s28 = sphi %s2467_s28, %s2879_s28   ;;  %s2366_s27 = sphi %s2465_s27, %s2878_s27   ;;  %s2362_s26 = sphi %s2463_s26, %s2882_s26   ;;  %s2358_s25 = sphi %s2461_s25, %s2881_s25  }
  0x14   : > { %2852 = sst [smem:[#allocation13_spill]] %s2374_s29  ;;  %s39_s15 = sadd.s32 1, %s2374_s29 }
  0x15   : > { %2853 = sst [smem:[#allocation14_spill]] %s2378_s30  ;;  %p40_p0 = scmp.ge.s32.totalorder %s39_s15, 2 }
  0x16   : > { %s101_s16 = sadd.s32 1, %s2366_s27  ;;  %p108_p1 = scmp.ne.s32.totalorder %s2366_s27, %s2362_s26 }
  0x17   : > { %p109_p2 = scmp.eq.s32.totalorder %s2378_s30, 0  ;;  %s2884_s15 = smov (%p40_p0, %s39_s15), 0 }
  0x18   : > { %2854 = sst [smem:[#allocation15_spill]] %s2884_s15  ;;  %p114_p4 = scmp.ne.s32.totalorder %s2362_s26, %s2358_s25 }
  0x19   : > { %p110_p3 = por %p109_p2, %p108_p1  ;;  %s98_s17 = ssub.s32 %s2374_s29, %s2884_s15 }
  0x1a   : > { %p115_p5 = scmp.eq.s32.totalorder %s2490_s14, 0  ;;  %p99_p6 = scmp.eq.s32.totalorder %s98_s17, 0 }
  0x1b   : > { %p2086_p8 = scmp.lt.s32.totalorder %s2378_s30, 2  ;;  %s441_s20 = sand.u32 1, %s2366_s27  }
  0x1c   : > { %p2503_p7 = por %p115_p5, %p114_p4  ;;  %s2513_s21 = sshll.u32 %s2374_s29, 6 }
  0x1d   : > { %s2509_s19 = scalar_select %p99_p6, %s2366_s27, %s101_s16  }
  0x1e   : > { %s1901_s22 = sshll.u32 %s441_s20, 6  ;;  %p2515_p9 = pnand %p2086_p8, %p110_p3 }
  0x1f   : > { %2856 = sst [smem:[#allocation16_spill]] %s2509_s19  ;;  %s489_s24 = sand.u32 1, %s2378_s30  }
  0x20   : > { %s2858_s7 = sld [smem:[#allocation21_spill]]  ;;  %s493_s13 = scalar_lea.vmem [#allocation5], %s1901_s22 }
  0x21   : > { %s501_s16 = sshll.u32 %s493_s13, 4  ;;  %p1910_p10 = scmp.ge.s32.totalorder %s2378_s30, 1  ;;  %s502_s16 = int_to_ptr.vmem [resolvable:$true] %s501_s16 }
  0x22   : > { %s490_s29 = scalar_lea.sflag [#allocation6], %s489_s24  ;;  %s2380_s27 = smov 64  }
  0x23   : > { %s2381_s1 = smov 4   ;;  %p555_p11 = scmp.lt.s32.totalorder %s2378_s30, 3 }
  0x24   : > { %s2860_s2 = sld [smem:[#allocation19_spill]]  ;;  %s442_s24 = scalar_lea.sflag [#allocation3], %s441_s20 }
  0x25   : > { %p2528_p12 = pnand %p1910_p10, %p555_p11  ;;  %s2861_s9 = sld [smem:[#allocation23_spill]] }
  0x26   : > { %s498_s15 = scalar_lea.hbm %s2858_s7, %s2513_s21  ;;  %s521_s30 = scalar_lea.vmem [#allocation7], %s1901_s22 }
  0x27   : > { %s499_s19 = sshll.u32 %s498_s15, 4  ;;  %s445_s15 = scalar_lea.vmem [#allocation2], %s1901_s22  ;;  %s500_s19 = int_to_ptr.hbm [resolvable:$true] %s499_s19 }
  0x28   : > { %2082 = dma.hbm_to_vmem [thread:$0]  (!%p2515_p9), %s500_s19, 1024, %s502_s16, %s490_s29, %s2380_s27, %s2380_s27, %s2381_s1  }
  0x29   : > { %s453_s7 = sshll.u32 %s445_s15, 4  ;;  %s529_s10 = sshll.u32 %s521_s30, 4  ;;  %s454_s7 = int_to_ptr.vmem [resolvable:$true] %s453_s7  ;;  %s530_s10 = int_to_ptr.vmem [resolvable:$true] %s529_s10 }
  0x2a   : > { %s450_s13 = scalar_lea.hbm %s2860_s2, %s2513_s21  ;;  %559 = sbr.rel (%p2528_p12) target bundleno = 2002 (0x7d2), region = 72 }
  0x2b   : > { %s451_s12 = sshll.u32 %s450_s13, 4  ;;  %s526_s16 = scalar_lea.hbm %s2861_s9, %s2513_s21  ;;  %s452_s12 = int_to_ptr.hbm [resolvable:$true] %s451_s12 }
  0x2c   : > { %2079 = dma.hbm_to_vmem [thread:$0]  (!%p2515_p9), %s452_s12, 1024, %s454_s7, %s442_s24, %s2380_s27, %s2380_s27, %s2381_s1  }
  0x2d   : > { %s527_s8 = sshll.u32 %s526_s16, 4  ;;  %s561_s25 = sand.u32 (!%p2528_p12), 1, %s2362_s26   ;;  %s528_s8 = int_to_ptr.hbm [resolvable:$true] %s527_s8 }
  0x2e   : > { %2085 = dma.hbm_to_vmem [thread:$0]  (!%p2515_p9), %s528_s8, 1024, %s530_s10, %s490_s29, %s2380_s27, %s2380_s27, %s2381_s1  }
  0x2f   : > { %s1911_s20 = sshll.u32 %s561_s25, 6  ;;  %s562_s17 = scalar_lea.sflag [#allocation3], %s561_s25 }
  0x30   : > { %s2547_s7 = scalar_lea.vmem [#allocation2], %s1911_s20 }
  0x31   : > { %2345 = dma.done.wait (%p2503_p7), %s562_s17, 1024  }
  0x32   : > { %2347 = vsyncadd (%p2503_p7), %s562_s17, 4294966272  ;;  %s571_s11 = sand.u32 1, %s2490_s14   ;;  %s2554_s1 = scalar_lea.vmem [#allocation5], %s1911_s20 }
  0x33   : > { %s572_s12 = scalar_lea.sflag [#allocation6], %s571_s11 }
  0x34   : > { %2349 = dma.done.wait (%p2503_p7), %s572_s12, 2048  }
  0x35   : > { %2351 = vsyncadd (%p2503_p7), %s572_s12, 4294965248  ;;  %p680_p13 = scmp.lt.s32.totalorder %s2370_s28, 1  ;;  %s2862_s3 = sld [smem:[#allocation20_spill]] }
  0x36   : > { %s2863_s17 = sld [smem:[#allocation22_spill]]  ;;  %s2598_s13 = scalar_lea.vmem [#allocation7], %s1911_s20 }
  0x37   : > { %s2562_s0 = scalar_select %p680_p13, %s2370_s28, 1 }
  0x38   : > { %s2864_s27 = sld [smem:[#allocation24_spill]]  ;;  %p1916_p0 = scmp.ne.s32.totalorder %s2370_s28, 0 }
  0x39   : > { %s2041_s8 = sshll.u32 %s2562_s0, 4  ;;  %s693_s19 = scalar_lea.vmem %s2826_s6, %s2562_s0 }
  0x3a   : > { %s2866_s22 = sld [smem:[#allocation26_spill]] }
  0x3b   : > { %s2572_s21 = scalar_lea.vmem %s2862_s3, %s2041_s8  ;;  %s2865_s8 = sld [smem:[#allocation25_spill]] }
  0x3c   : > { %s696_s11 = scalar_lea.vmem %s2863_s17, %s2562_s0  ;;  %s2867_s16 = sld [smem:[#allocation17_spill]] (!%p1916_p0) }
  0x3d   : > { %711 = sbr.rel (%p1916_p0) target bundleno = 69 (0x45), region = 88 }
  0x3e   : > { %s699_s29 = scalar_lea.vmem %s2864_s27, %s2562_s0 }
  0x40   : > { %s705_s23 = scalar_lea.vmem %s2866_s22, %s2562_s0 }
  0x41   : > { %s702_s18 = scalar_lea.vmem %s2865_s8, %s2562_s0 }
  0x42   : > { %v712_v0 = vld [vmem:[%s2867_s16] sm:$0xff]  ;;  %v713_v1 = vld [vmem:[%s2867_s16 + $0x8] sm:$0xff] }
  0x43   : > { %714 = vst [vmem:[#allocation8] sm:$0xff] %v712_v0 }
  0x44   : > { %715 = vst [vmem:[#allocation8 + $0x8] sm:$0xff] %v713_v1 }
  0x45 PF: > { %v2049_v2 = vld [vmem:[%s2547_s7 + $0x38] sm:$0xff]  ;;  %v2048_v3 = vld [vmem:[%s2547_s7 + $0x30] sm:$0xff]  ;;  %v2047_v4 = vld [vmem:[%s2547_s7 + $0x28] sm:$0xff]  ;;  %s2382_s2 = smov 104   ;;  %s2383_s3 = smov 112   ;;  %vm843_vm0 = vcmask 64512  }
  0x46   : > { %788 = vmatpush.bf16.msra.mxu0 %v2049_v2  ;;  %v2046_v5 = vld [vmem:[%s2547_s7 + $0x20] sm:$0xff]  ;;  %v2045_v6 = vld [vmem:[%s2547_s7 + $0x18] sm:$0xff]  ;;  %v2044_v7 = vld [vmem:[%s2547_s7 + $0x10] sm:$0xff]  ;;  %s2384_s9 = smov 120   ;;  %s2385_s28 = smov 96   ;;  %vm1132_vm1 = vcmask 1043456  }
  0x47   : > { %v2043_v8 = vld [vmem:[%s2547_s7 + $0x8] sm:$0xff]  ;;  %v2042_v9 = vld [vmem:[%s2547_s7] sm:$0xff]  ;;  %s2386_s20 = smov 64   ;;  %s2868_s10 = sld [smem:[#allocation18_spill]] }
  0x48   : > { %s2869_s22 = scalar_lea.vmem %s2824_s4, %s2562_s0  ;;  %s2870_s24 = scalar_lea.vmem %s2825_s5, %s2562_s0 }
  0x49   : > { %p2087_p1 = scmp.eq.s32.totalorder %s2490_s14, 1 }
  0x4a   : > { %789 = vmatpush.bf16.msra.mxu0 %v2048_v3  ;;  %v2615_v10 = vld [vmem:[#allocation8] sm:$0xff] }
  0x4b   : > { %v2617_v11 = vld [vmem:[#allocation8 + $0x8] sm:$0xff] }
  0x4c   : > { %v718_v12 = vpack.c.bf16 %v2617_v11, %v2615_v10 }
  0x4d   : > { %v2153_v57 = vld [vmem:[%s2868_s10 + $0x1] ss:$0 sm:$0xff] }
  0x4e   : > { %790 = vmatpush.bf16.msra.mxu0 %v2047_v4 }
  0x52   : > { %791 = vmatpush.bf16.msra.mxu0 %v2046_v5  ;;  %v2154_v5 = vld [vmem:[%s2868_s10] ss:$0 sm:$0xff] }
  0x56   : > { %792 = vmatpush.bf16.msra.mxu0 %v2045_v6 }
  0x5a   : > { %793 = vmatpush.bf16.msra.mxu0 %v2044_v7 }
  0x5e   : > { %794 = vmatpush.bf16.msra.mxu0 %v2043_v8 }
  0x62   : > { %795 = vmatpush.bf16.msra.mxu0 %v2042_v9 }
  0x65   : > { %796 = vmatmul.bf16.vlgmr.msra.gmra.mxu0 %v718_v12 }
  0xe2   : > { %v797_v13 = vpop.f32.mrf.mxu0 }
  0xe3   : > { %816 = vrot.lane.b32.xlu2 %v797_v13, %s2382_s2  ;;  %810 = vrot.lane.b32.xlu0 %v797_v13, %s2383_s3  ;;  %v822_v15 = vpack.c.bf16 %v797_v13, %v797_v13 }
  0xe5   : > { %v839_v20 = vunpack.c.l.b16 %v822_v15 }
  0xe7   : > { %v2622_v21 = vpack.c.b16 %v839_v20, %v839_v20 }
  0xea   : > { %v799_v14 = vpop.f32.mrf.mxu0 }
  0xeb   : > { %v823_v16 = vpack.c.bf16 %v799_v14, %v799_v14  ;;  %818 = vrot.lane.b32.xlu1 %v799_v14, %s2382_s2  ;;  %v2148_v17 = vpack.i.bf16 %v799_v14, %v797_v13 }
  0xed   : > { %2149 = vrot.lane.b32.xlu0 %v2148_v17, %s2384_s9  ;;  %v864_v18 = vunpack.c.l.b16 %v823_v16 }
  0xef   : > { %v865_v19 = vpack.c.b16 %v864_v18, %v864_v18 }
  0xf1   : > { %866 = vrot.lane.b32.xlu2 %v865_v19, %s2385_s28 }
  0xf3   : > { %812 = vrot.lane.b32.xlu1 %v799_v14, %s2383_s3 }
  0xf5   : > { %841 = vrot.lane.b32.xlu0 %v2622_v21, %s2385_s28 }
 0x13d   : > { %v817_v22 = vpop.permute.xlu2 %816 }
 0x13e   : > { %v828_v41 = vpack.c.bf16 %v817_v22, %v817_v22 }
 0x140   : > { %v984_v47 = vunpack.c.l.b16 %v828_v41 }
 0x142   : > { %v2642_v49 = vpack.c.b16 %v984_v47, %v984_v47 }
 0x14b   : > { %v867_v23 = vpop.permute.xlu2 %866 }
 0x14c   : > { %v872_v24 = vsel %vm843_vm0, %v867_v23, 0 }
 0x14d   : > { %881 = vmatpush.bf16.xpose.msra.mxu2 %v872_v24 }
 0x154   : > { %1951 = vmatmul.msk.bf16.vlgmr.msra.gmra.mxu2 %vm843_vm0, %v823_v16 }
 0x155   : > { %v811_v25 = vpop.permute.xlu0 %810 }
 0x156   : > { %v826_v26 = vpack.c.bf16 %v811_v25, %v811_v25 }
 0x158   : > { %v936_v27 = vunpack.c.l.b16 %v826_v26 }
 0x15a   : > { %v2628_v28 = vpack.c.b16 %v936_v27, %v936_v27 }
 0x15c   : > { %938 = vrot.lane.b32.xlu1 %v2628_v28, %s2385_s28 }
 0x15d   : > { %v819_v29 = vpop.permute.xlu1 %818 }
 0x15e   : > { %v829_v30 = vpack.c.bf16 %v819_v29, %v819_v29 }
 0x15f   : > { %v2150_v31 = vpop.permute.xlu0 %2149 }
 0x160   : > { %v1008_v32 = vunpack.c.l.b16 %v829_v30  ;;  %v2152_v33 = vunpack.i.h.bf16 %v2150_v31  ;;  %v2151_v34 = vunpack.i.l.bf16 %v2150_v31 }
 0x162   : > { %v2632_v35 = vpack.c.b16 %v1008_v32, %v1008_v32  ;;  %v825_v36 = vpack.c.bf16 %v2152_v33, %v2152_v33  ;;  %v824_v37 = vpack.c.bf16 %v2151_v34, %v2151_v34 }
 0x164   : > { %v912_v38 = vunpack.c.l.b16 %v825_v36  ;;  %v888_v39 = vunpack.c.l.b16 %v824_v37  ;;  %1010 = vrot.lane.b32.xlu1 %v2632_v35, %s2385_s28 }
 0x165   : > { %v813_v40 = vpop.permute.xlu1 %812 }
 0x166   : > { %v2636_v42 = vpack.c.b16 %v912_v38, %v912_v38  ;;  %v889_v43 = vpack.c.b16 %v888_v39, %v888_v39  ;;  %v827_v44 = vpack.c.bf16 %v813_v40, %v813_v40 }
 0x167   : > { %v842_v45 = vpop.permute.xlu0 %841 }
 0x168   : > { %914 = vrot.lane.b32.xlu0 %v2636_v42, %s2385_s28  ;;  %890 = vrot.lane.b32.xlu2 %v889_v43, %s2385_s28  ;;  %v848_v46 = vsel %vm843_vm0, %v842_v45, 0  ;;  %v960_v48 = vunpack.c.l.b16 %v827_v44 }
 0x169   : > { %857 = vmatpush.bf16.xpose.msra.mxu1 %v848_v46 }
 0x16a   : > { %v2644_v50 = vpack.c.b16 %v960_v48, %v960_v48 }
 0x170   : > { %1950 = vmatmul.msk.bf16.vlgmr.msra.gmra.mxu1 %vm843_vm0, %v822_v15  ;;  %986 = vrot.lane.b32.xlu0 %v2642_v49, %s2385_s28 }
 0x171   : > { %962 = vrot.lane.b32.xlu2 %v2644_v50, %s2385_s28 }
 0x178   : > { %1149 = vrot.lane.b32.xlu0 %v865_v19, %s2386_s20 }
 0x1c2   : > { %v891_v51 = vpop.permute.xlu2 %890 }
 0x1c3   : > { %v896_v52 = vsel %vm843_vm0, %v891_v51, 0 }
 0x1c4   : > { %905 = vmatpush.bf16.xpose.msra.mxu3 %v896_v52 }
 0x1cb   : > { %v963_v53 = vpop.permute.xlu2 %962  ;;  %1952 = vmatmul.msk.bf16.vlgmr.msra.gmra.mxu3 %vm843_vm0, %v824_v37 }
 0x1cc   : > { %v968_v54 = vsel %vm843_vm0, %v963_v53, 0 }
 0x1cd   : > { %977 = vmatpush.bf16.xpose.msrb.mxu3 %v968_v54 }
 0x1ce   : > { %v939_v55 = vpop.permute.xlu1 %938 }
 0x1cf   : > { %v944_v56 = vsel %vm843_vm0, %v939_v55, 0 }
 0x1d0   : > { %953 = vmatpush.bf16.xpose.msrb.mxu2 %v944_v56 }
 0x1d6   : > { %v1011_v58 = vpop.permute.xlu1 %1010 }
 0x1d7   : > { %v1016_v59 = vsel %vm843_vm0, %v1011_v58, 0  ;;  %v883_v60 = vpop.f32.mrf.mxu2  ;;  %1954 = vmatmul.msk.bf16.vlgmr.msrb.gmra.mxu2 %vm843_vm0, %v826_v26 }
 0x1d8   : > { %v2661_v61 = vadd.f32 %v2153_v57, %v883_v60  ;;  %1025 = vmatpush.bf16.xpose.msra.mxu2 %v1016_v59 }
 0x1da   : > { %v915_v62 = vpop.permute.xlu0 %914  ;;  %v1034_v63 = vsel %vm843_vm0, %v2661_v61, -inf }
 0x1db   : > { %1035 = vmax.xlane.f32.xlu1 %v1034_v63  ;;  %1955 = vmatmul.msk.bf16.vlgmr.msrb.gmra.mxu3 %vm843_vm0, %v827_v44  ;;  %v920_v0 = vsel %vm843_vm0, %v915_v62, 0 }
 0x1dc   : > { %929 = vmatpush.bf16.xpose.msrb.mxu1 %v920_v0 }
 0x1df   : > { %v885_v1 = vpop.f32.mrf.mxu2 }
 0x1e2   : > { %v987_v2 = vpop.permute.xlu0 %986 }
 0x1e3   : > { %v992_v3 = vsel %vm843_vm0, %v987_v2, 0  ;;  %1953 = vmatmul.msk.bf16.vlgmr.msrb.gmra.mxu1 %vm843_vm0, %v825_v36 }
 0x1e4   : > { %1001 = vmatpush.bf16.xpose.msra.mxu1 %v992_v3 }
 0x1e7   : > { %1957 = vmatmul.msk.bf16.vlgmr.msra.gmra.mxu2 %vm843_vm0, %v829_v30 }
 0x1ea   : > { %v1150_v4 = vpop.permute.xlu0 %1149 }
 0x1eb   : > { %v1155_v6 = vsel %vm1132_vm1, %v1150_v4, 0 }
 0x1ec   : > { %1164 = vmatpush.bf16.msrb.mxu1 %v1155_v6 }
 0x1ed   : > { %v859_v7 = vpop.f32.mrf.mxu1 }
 0x1ee   : > { %v860_v8 = vadd.f32 %v2154_v5, %v859_v7 }
 0x1f0   : > { %v1031_v9 = vsel %vm843_vm0, %v860_v8, -inf }
 0x1f1   : > { %1032 = vmax.xlane.f32.xlu0 %v1031_v9 }
 0x1f3   : > { %1956 = vmatmul.msk.bf16.vlgmr.msra.gmra.mxu1 %vm843_vm0, %v828_v41 }
 0x1f4   : > { %1127 = vrot.lane.b32.xlu1 %v2622_v21, %s2386_s20 }
 0x1f5   : > { %v861_v12 = vpop.f32.mrf.mxu1 }
 0x205   : > { %1170 = vrot.lane.b32.xlu0 %v889_v43, %s2386_s20 }
 0x24e   : > { %v907_v13 = vpop.f32.mrf.mxu3  ;;  %v1036_v20 = vpop.xlane.xlu1 %1035 }
 0x24f   : > { %v908_v14 = vadd.f32 %v2154_v5, %v907_v13  ;;  %v1056_v48 = vsub.f32 %v2661_v61, %v1036_v20 }
 0x251   : > { %v1037_v15 = vsel %vm843_vm0, %v908_v14, -inf  ;;  %v1065_v51 = vmul.f32 1.442695, %v1056_v48 }
 0x252   : > { %1038 = vmax.xlane.f32.xlu2 %v1037_v15 }
 0x256   : > { %v909_v16 = vpop.f32.mrf.mxu3 }
 0x25a   : > { %v955_v17 = vpop.f32.mrf.mxu2 }
 0x25b   : > { %v956_v18 = vadd.f32 %v2154_v5, %v955_v17 }
 0x25d   : > { %v1043_v19 = vsel %vm843_vm0, %v956_v18, -inf }
 0x25e   : > { %1044 = vmax.xlane.f32.xlu2 %v1043_v19  ;;  %v979_v22 = vpop.f32.mrf.mxu3 }
 0x25f   : > { %v980_v37 = vadd.f32 %v2153_v57, %v979_v22 }
 0x260   : > { %v931_v23 = vpop.f32.mrf.mxu1 }
 0x261   : > { %v932_v24 = vadd.f32 %v2153_v57, %v931_v23  ;;  %v1046_v41 = vsel %vm843_vm0, %v980_v37, -inf }
 0x262   : > { %v957_v25 = vpop.f32.mrf.mxu2 }
 0x263   : > { %v1040_v21 = vsel %vm843_vm0, %v932_v24, -inf }
 0x264   : > { %v1033_v34 = vpop.xlane.xlu0 %1032 }
 0x265   : > { %v1055_v46 = vsub.f32 %v860_v8, %v1033_v34 }
 0x266   : > { %v1128_v26 = vpop.permute.xlu1 %1127  ;;  %1041 = vmax.xlane.f32.xlu2 %v1040_v21  ;;  %v981_v27 = vpop.f32.mrf.mxu3 }
 0x267   : > { %v1134_v29 = vsel %vm1132_vm1, %v1128_v26, 0  ;;  %v1063_v47 = vmul.f32 1.442695, %v1055_v46 }
 0x268   : > { %v933_v30 = vpop.f32.mrf.mxu1  ;;  %1143 = vmatpush.bf16.msra.mxu3 %v1134_v29 }
 0x269   : > { %2162 = vpow2.f32 %v1063_v47 }
 0x26a   : > { %v1027_v31 = vpop.f32.mrf.mxu2  ;;  %2164 = vpow2.f32 %v1065_v51 }
 0x26b   : > { %v1028_v32 = vadd.f32 %v2153_v57, %v1027_v31 }
 0x26d   : > { %v1052_v33 = vsel %vm843_vm0, %v1028_v32, -inf }
 0x26e   : > { %1053 = vmax.xlane.f32.xlu1 %v1052_v33 }
 0x26f   : > { %v2163_v52 = vpop.eup %2162 }
 0x270   : > { %v1003_v36 = vpop.f32.mrf.mxu1  ;;  %v1079_v53 = vsel %vm843_vm0, %v2163_v52, 0.0  ;;  %v2693_v54 = vpop.eup %2164 }
 0x271   : > { %v1004_v38 = vadd.f32 %v2154_v5, %v1003_v36  ;;  %v1082_v55 = vsel %vm843_vm0, %v2693_v54, 0.0 }
 0x272   : > { %v1029_v39 = vpop.f32.mrf.mxu2 }
 0x273   : > { %v1049_v40 = vsel %vm843_vm0, %v1004_v38, -inf }
 0x274   : > { %1050 = vmax.xlane.f32.xlu0 %v1049_v40 }
 0x276   : > { %1047 = vmax.xlane.f32.xlu1 %v1046_v41 }
 0x277   : > { %v1171_v43 = vpop.permute.xlu0 %1170 }
 0x278   : > { %v1176_v44 = vsel %vm1132_vm1, %v1171_v43, 0  ;;  %v1005_v45 = vpop.f32.mrf.mxu1 }
 0x279   : > { %1185 = vmatpush.bf16.msra.mxu1 %v1176_v44 }
 0x27e   : > { %1191 = vrot.lane.b32.xlu2 %v2636_v42, %s2386_s20 }
 0x288   : > { %1275 = vrot.lane.b32.xlu0 %v2632_v35, %s2386_s20 }
 0x2a7   : > { %1080 = vadd.xlane.f32.xlu2 %v1079_v53 }
 0x2af   : > { %1083 = vadd.xlane.f32.xlu2 %v1082_v55 }
 0x2c5   : > { %v1039_v42 = vpop.xlane.xlu2 %1038 }
 0x2c6   : > { %v1057_v56 = vsub.f32 %v908_v14, %v1039_v42 }
 0x2c8   : > { %v1067_v35 = vmul.f32 1.442695, %v1057_v56 }
 0x2ca   : > { %2166 = vpow2.f32 %v1067_v35 }
 0x2d0   : > { %v2167_v57 = vpop.eup %2166 }
 0x2d1   : > { %v1045_v58 = vpop.xlane.xlu2 %1044  ;;  %v1085_v59 = vsel %vm843_vm0, %v2167_v57, 0.0 }
 0x2d2   : > { %v1059_v60 = vsub.f32 %v956_v18, %v1045_v58  ;;  %1086 = vadd.xlane.f32.xlu1 %v1085_v59 }
 0x2d4   : > { %v1071_v61 = vmul.f32 1.442695, %v1059_v60 }
 0x2d6   : > { %2168 = vpow2.f32 %v1071_v61 }
 0x2d9   : > { %v1042_v62 = vpop.xlane.xlu2 %1041 }
 0x2da   : > { %v1058_v63 = vsub.f32 %v932_v24, %v1042_v62 }
 0x2dc   : > { %v2698_v0 = vpop.eup %2168  ;;  %v1069_v1 = vmul.f32 1.442695, %v1058_v63 }
 0x2dd   : > { %v1091_v2 = vsel %vm843_vm0, %v2698_v0, 0.0 }
 0x2de   : > { %2170 = vpow2.f32 %v1069_v1  ;;  %1092 = vadd.xlane.f32.xlu2 %v1091_v2  ;;  %v1296_v1 = vld [vmem:[%s2572_s21] sm:$0xf] }
 0x2df   : > { %v1326_v2 = vsel %vm1132_vm1, %v1296_v1, 0  ;;  %v2054_v1 = vld [vmem:[%s2554_s1 + $0x20] sm:$0xff] }
 0x2e1   : > { %v1054_v3 = vpop.xlane.xlu1 %1053  ;;  %v1192_v4 = vpop.permute.xlu2 %1191 }
 0x2e2   : > { %v1062_v5 = vsub.f32 %v1028_v32, %v1054_v3  ;;  %v1197_v6 = vsel %vm1132_vm1, %v1192_v4, 0 }
 0x2e3   : > { %1206 = vmatpush.bf16.msrb.mxu2 %v1197_v6 }
 0x2e4   : > { %v2171_v7 = vpop.eup %2170  ;;  %v1077_v8 = vmul.f32 1.442695, %v1062_v5 }
 0x2e5   : > { %v1088_v9 = vsel %vm843_vm0, %v2171_v7, 0.0 }
 0x2e6   : > { %2172 = vpow2.f32 %v1077_v8  ;;  %1089 = vadd.xlane.f32.xlu1 %v1088_v9 }
 0x2e7   : > { %v1051_v12 = vpop.xlane.xlu0 %1050 }
 0x2e8   : > { %v1061_v13 = vsub.f32 %v1004_v38, %v1051_v12 }
 0x2e9   : > { %v1048_v14 = vpop.xlane.xlu1 %1047 }
 0x2ea   : > { %v1075_v15 = vmul.f32 1.442695, %v1061_v13  ;;  %v1060_v16 = vsub.f32 %v980_v37, %v1048_v14  ;;  %v1299_v13 = vld [vmem:[%s2572_s21 + $0xc] sm:$0xf] }
 0x2eb   : > { %v1370_v14 = vsel %vm1132_vm1, %v1299_v13, 0  ;;  %v2064_v13 = vld [vmem:[%s2598_s13 + $0x30] sm:$0xff] }
 0x2ec   : > { %v2173_v17 = vpop.eup %2172  ;;  %2174 = vpow2.f32 %v1075_v15  ;;  %v1073_v18 = vmul.f32 1.442695, %v1060_v16  ;;  %v1298_v15 = vld [vmem:[%s2572_s21 + $0x8] sm:$0xf] }
 0x2ed   : > { %v1100_v19 = vsel %vm843_vm0, %v2173_v17, 0.0  ;;  %v1347_v16 = vsel %vm1132_vm1, %v1298_v15, 0 }
 0x2ee   : > { %2176 = vpow2.f32 %v1073_v18  ;;  %1101 = vadd.xlane.f32.xlu0 %v1100_v19 }
 0x2f2   : > { %v2175_v20 = vpop.eup %2174 }
 0x2f3   : > { %v1097_v22 = vsel %vm843_vm0, %v2175_v20, 0.0 }
 0x2f4   : > { %v2177_v23 = vpop.eup %2176  ;;  %1098 = vadd.xlane.f32.xlu1 %v1097_v22 }
 0x2f5   : > { %v1094_v24 = vsel %vm843_vm0, %v2177_v23, 0.0 }
 0x2f6   : > { %1095 = vadd.xlane.f32.xlu2 %v1094_v24 }
 0x2fa   : > { %v1276_v25 = vpop.permute.xlu0 %1275 }
 0x2fb   : > { %v1281_v21 = vsel %vm1132_vm1, %v1276_v25, 0 }
 0x2fc   : > { %1290 = vmatpush.bf16.msra.mxu2 %v1281_v21 }
 0x302   : > { %1233 = vrot.lane.b32.xlu0 %v2644_v50, %s2386_s20 }
 0x30d   : > { %1212 = vrot.lane.b32.xlu1 %v2628_v28, %s2386_s20 }
 0x30e   : > { %1254 = vrot.lane.b32.xlu2 %v2642_v49, %s2386_s20 }
 0x31a   : > { %v1081_v26 = vpop.xlane.xlu2 %1080 }
 0x31b   : > { %2178 = vrcp.f32 %v1081_v26 }
 0x321   : > { %v2179_v27 = vpop.eup %2178 }
 0x322   : > { %v1111_v29 = vmul.f32 %v2179_v27, %v2163_v52  ;;  %v1084_v30 = vpop.xlane.xlu2 %1083 }
 0x323   : > { %2180 = vrcp.f32 %v1084_v30 }
 0x324   : > { %v1119_v31 = vpack.c.bf16 %v1111_v29, %v1111_v29 }
 0x326   : > { %1958 = vmatmul.msk.bf16.vlgmr.msra.gmra.mxu3 %vm843_vm0, %v1119_v31 }
 0x329   : > { %v2181_v32 = vpop.eup %2180 }
 0x32a   : > { %v1112_v33 = vmul.f32 %v2181_v32, %v2693_v54 }
 0x32c   : > { %v1120_v34 = vpack.c.bf16 %v1112_v33, %v1112_v33 }
 0x32e   : > { %1959 = vmatmul.msk.bf16.vlgmr.msrb.gmra.mxu1 %vm843_vm0, %v1120_v34 }
 0x345   : > { %v1087_v50 = vpop.xlane.xlu1 %1086 }
 0x346   : > { %2182 = vrcp.f32 %v1087_v50 }
 0x34c   : > { %v2183_v28 = vpop.eup %2182 }
 0x34d   : > { %v1113_v36 = vmul.f32 %v2183_v28, %v2167_v57 }
 0x34f   : > { %v1121_v49 = vpack.c.bf16 %v1113_v36, %v1113_v36  ;;  %v2155_v36 = vld [vmem:[%s2869_s22] ss:$0 sm:$0xff]  ;;  %s2875_s22 = sld [smem:[#allocation27_spill]] }
 0x351   : > { %1960 = vmatmul.msk.bf16.vlgmr.msra.gmra.mxu1 %vm843_vm0, %v1121_v49  ;;  %v1093_v39 = vpop.xlane.xlu2 %1092 }
 0x355   : > { %s1686_s0 = sshll.u32 %s2875_s22, 4  ;;  %s1687_s0 = int_to_ptr.hbm [resolvable:$true] %s1686_s0 }
 0x359   : > { %v1090_v37 = vpop.xlane.xlu1 %1089 }
 0x35a   : > { %2184 = vrcp.f32 %v1090_v37 }
 0x360   : > { %v2185_v38 = vpop.eup %2184 }
 0x361   : > { %v1114_v40 = vmul.f32 %v2185_v38, %v2171_v7  ;;  %v1102_v43 = vpop.xlane.xlu0 %1101  ;;  %v1297_v7 = vld [vmem:[%s2572_s21 + $0x4] sm:$0xf] }
 0x362   : > { %2186 = vrcp.f32 %v1102_v43  ;;  %v1306_v8 = vsel %vm1132_vm1, %v1297_v7, 0 }
 0x363   : > { %v1122_v41 = vpack.c.bf16 %v1114_v40, %v1114_v40 }
 0x365   : > { %1961 = vmatmul.msk.bf16.vlgmr.msrb.gmra.mxu2 %vm843_vm0, %v1122_v41 }
 0x366   : > { %1379 = vmatpush.bf16.msrb.mxu2 %v1370_v14 }
 0x367   : > { %v1099_v44 = vpop.xlane.xlu1 %1098 }
 0x368   : > { %2188 = vrcp.f32 %v1099_v44  ;;  %v2187_v46 = vpop.eup %2186 }
 0x369   : > { %v1096_v45 = vpop.xlane.xlu2 %1095  ;;  %v1118_v48 = vmul.f32 %v2187_v46, %v2173_v17 }
 0x36a   : > { %2190 = vrcp.f32 %v1096_v45 }
 0x36b   : > { %v1126_v55 = vpack.c.bf16 %v1118_v48, %v1118_v48  ;;  %2192 = vrcp.f32 %v1093_v39 }
 0x36e   : > { %v2189_v47 = vpop.eup %2188 }
 0x36f   : > { %v1117_v52 = vmul.f32 %v2189_v47, %v2175_v20 }
 0x370   : > { %v2191_v51 = vpop.eup %2190 }
 0x371   : > { %v1255_v53 = vpop.permute.xlu2 %1254  ;;  %v1116_v42 = vmul.f32 %v2191_v51, %v2177_v23  ;;  %v1125_v56 = vpack.c.bf16 %v1117_v52, %v1117_v52  ;;  %v2193_v59 = vpop.eup %2192  ;;  %v719_v51 = vlaneseq }
 0x372   : > { %v1260_v54 = vsel %vm1132_vm1, %v1255_v53, 0  ;;  %v1115_v60 = vmul.f32 %v2193_v59, %v2698_v0 }
 0x373   : > { %1269 = vmatpush.bf16.msrb.mxu1 %v1260_v54  ;;  %v1124_v58 = vpack.c.bf16 %v1116_v42, %v1116_v42  ;;  %v720_v52 = vand.u32 127, %v719_v51 }
 0x374   : > { %v1234_v35 = vpop.permute.xlu0 %1233  ;;  %v1123_v63 = vpack.c.bf16 %v1115_v60, %v1115_v60 }
 0x375   : > { %1965 = vmatmul.msk.bf16.vlgmr.msra.gmra.mxu2 %vm843_vm0, %v1126_v55  ;;  %v1239_v57 = vsel %vm1132_vm1, %v1234_v35, 0  ;;  %vm721_vm2 = vcmp.lt.s32.totalorder %v720_v52, 32  ;;  %v2387_v55 = vmov 0.0  }
 0x376   : > { %1248 = vmatpush.bf16.msrb.mxu0 %v1239_v57  ;;  %1964 = vmatmul.msk.bf16.vlgmr.msrb.gmra.mxu1 %vm843_vm0, %v1125_v56  ;;  %v2746_v42 = vsel %vm721_vm2, 1.0, %v2387_v55 }
 0x377   : > { %1356 = vmatpush.bf16.msra.mxu1 %v1347_v16 }
 0x379   : > { %1963 = vmatmul.msk.bf16.vlgmr.msrb.gmra.mxu0 %vm843_vm0, %v1124_v58 }
 0x37a   : > { %1335 = vmatpush.bf16.msra.mxu0 %v1326_v2  ;;  %v2053_v2 = vld [vmem:[%s2554_s1 + $0x18] sm:$0xff] }
 0x37f   : > { %v1213_v61 = vpop.permute.xlu1 %1212 }
 0x380   : > { %v1218_v62 = vsel %vm1132_vm1, %v1213_v61, 0  ;;  %v2057_v61 = vld [vmem:[%s2554_s1 + $0x38] sm:$0xff] }
 0x381   : > { %1227 = vmatpush.bf16.msrb.mxu3 %v1218_v62  ;;  %v2056_v62 = vld [vmem:[%s2554_s1 + $0x30] sm:$0xff] }
 0x384   : > { %1962 = vmatmul.msk.bf16.vlgmr.msrb.gmra.mxu3 %vm843_vm0, %v1123_v63  ;;  %v2055_v63 = vld [vmem:[%s2554_s1 + $0x28] sm:$0xff] }
 0x385   : > { %1315 = vmatpush.bf16.msra.mxu3 %v1306_v8  ;;  %v2065_v8 = vld [vmem:[%s2598_s13 + $0x38] sm:$0xff] }
 0x386   : > { %1604 = vmatpush.bf16.msrb.mxu0 %v2065_v8 }
 0x389   : > { %1519 = vmatpush.bf16.msrb.mxu3 %v2057_v61 }
 0x38a   : > { %1605 = vmatpush.bf16.msrb.mxu0 %v2064_v13 }
 0x38d   : > { %1520 = vmatpush.bf16.msrb.mxu3 %v2056_v62 }
 0x391   : > { %1521 = vmatpush.bf16.msrb.mxu3 %v2055_v63 }
 0x395   : > { %1522 = vmatpush.bf16.msrb.mxu3 %v2054_v1 }
 0x399   : > { %1523 = vmatpush.bf16.msrb.mxu3 %v2053_v2 }
 0x3a9   : > { %v1145_v3 = vpop.f32.mrf.mxu3 }
 0x3ab   : > { %v1166_v4 = vpop.f32.mrf.mxu1 }
 0x3ac   : > { %v1300_v5 = vpack.c.bf16 %v1166_v4, %v1145_v3  ;;  %v2052_v3 = vld [vmem:[%s2554_s1 + $0x10] sm:$0xff]  ;;  %v2051_v4 = vld [vmem:[%s2554_s1 + $0x8] sm:$0xff] }
 0x3ad   : > { %1524 = vmatpush.bf16.msrb.mxu3 %v2052_v3 }
 0x3ae   : > { %1967 = vmatmul.msk.bf16.vlgmr.msra.gmra.mxu0 %vm843_vm0, %v1300_v5 }
 0x3b1   : > { %v1147_v6 = vpop.f32.mrf.mxu3  ;;  %1525 = vmatpush.bf16.msrb.mxu3 %v2051_v4 }
 0x3b3   : > { %v1168_v0 = vpop.f32.mrf.mxu1 }
 0x3b4   : > { %v2050_v0 = vld [vmem:[%s2554_s1] sm:$0xff]  ;;  %s2390_s1 = smov 8  }
 0x3b5   : > { %1526 = vmatpush.bf16.msrb.mxu3 %v2050_v0 }
 0x3ce   : > { %v1187_v9 = vpop.f32.mrf.mxu1 }
 0x3d6   : > { %v1189_v12 = vpop.f32.mrf.mxu1 }
 0x3e8   : > { %v1208_v17 = vpop.f32.mrf.mxu2 }
 0x3e9   : > { %v1301_v18 = vpack.c.bf16 %v1208_v17, %v1187_v9  ;;  %v2063_v17 = vld [vmem:[%s2598_s13 + $0x28] sm:$0xff] }
 0x3ea   : > { %1606 = vmatpush.bf16.msrb.mxu0 %v2063_v17 }
 0x3eb   : > { %1966 = vmatmul.msk.bf16.vlgmr.msra.gmra.mxu3 %vm843_vm0, %v1301_v18 }
 0x3f0   : > { %v1210_v19 = vpop.f32.mrf.mxu2 }
 0x3f3   : > { %v1271_v20 = vpop.f32.mrf.mxu1 }
 0x3f6   : > { %v1250_v22 = vpop.f32.mrf.mxu0 }
 0x3f8   : > { %v1292_v23 = vpop.f32.mrf.mxu2 }
 0x3f9   : > { %v1365_v24 = vpack.c.bf16 %v1292_v23, %v1271_v20  ;;  %v2062_v20 = vld [vmem:[%s2598_s13 + $0x20] sm:$0xff] }
 0x3fa   : > { %1607 = vmatpush.bf16.msrb.mxu0 %v2062_v20 }
 0x3fb   : > { %v1273_v25 = vpop.f32.mrf.mxu1  ;;  %1969 = vmatmul.msk.bf16.vlgmr.msrb.gmra.mxu2 %vm843_vm0, %v1365_v24 }
 0x3fe   : > { %v1252_v21 = vpop.f32.mrf.mxu0 }
 0x400   : > { %v1294_v26 = vpop.f32.mrf.mxu2 }
 0x407   : > { %v1229_v27 = vpop.f32.mrf.mxu3 }
 0x408   : > { %v1342_v29 = vpack.c.bf16 %v1250_v22, %v1229_v27 }
 0x40a   : > { %1968 = vmatmul.msk.bf16.vlgmr.msra.gmra.mxu1 %vm843_vm0, %v1342_v29 }
 0x40f   : > { %v1231_v30 = vpop.f32.mrf.mxu3 }
 0x42b   : > { %v1337_v32 = vpop.f32.mrf.mxu0 }
 0x433   : > { %v1339_v39 = vpop.f32.mrf.mxu0 }
 0x46e   : > { %v1317_v31 = vpop.f32.mrf.mxu3 }
 0x46f   : > { %v1338_v33 = vadd.f32 %v1337_v32, %v1317_v31  ;;  %v2156_v31 = vld [vmem:[%s2870_s24] ss:$0 sm:$0xff] }
 0x476   : > { %v1319_v37 = vpop.f32.mrf.mxu3 }
 0x477   : > { %v1340_v40 = vadd.f32 %v1339_v39, %v1319_v37  ;;  %v2061_v39 = vld [vmem:[%s2598_s13 + $0x18] sm:$0xff] }
 0x478   : > { %1608 = vmatpush.bf16.msrb.mxu0 %v2061_v39 }
 0x47e   : > { %v1381_v34 = vpop.f32.mrf.mxu2 }
 0x486   : > { %v1383_v45 = vpop.f32.mrf.mxu2 }
 0x487   : > { %v1358_v50 = vpop.f32.mrf.mxu1 }
 0x488   : > { %v1363_v28 = vadd.f32 %v1358_v50, %v1338_v33 }
 0x48a   : > { %v1386_v49 = vadd.f32 %v1381_v34, %v1363_v28  ;;  %v2157_v28 = vld [vmem:[%s693_s19] ss:$0 sm:$0xff] }
 0x48c   : > { %v1392_v38 = vadd.f32 %v2155_v36, %v1386_v49 }
 0x48e   : > { %v1394_v41 = vadd.f32 %v1392_v38, %v2615_v10 }
 0x48f   : > { %v1360_v43 = vpop.f32.mrf.mxu1 }
 0x490   : > { %v1364_v44 = vadd.f32 %v1360_v43, %v1340_v40  ;;  %1396 = vadd.xlane.f32.xlu0 %v1394_v41  ;;  %v2060_v40 = vld [vmem:[%s2598_s13 + $0x10] sm:$0xff]  ;;  %v2058_v43 = vld [vmem:[%s2598_s13] sm:$0xff] }
 0x491   : > { %1609 = vmatpush.bf16.msrb.mxu0 %v2060_v40 }
 0x492   : > { %v1387_v46 = vadd.f32 %v1383_v45, %v1364_v44  ;;  %v2158_v45 = vld [vmem:[%s696_s11] ss:$0 sm:$0xff] }
 0x494   : > { %v1393_v47 = vadd.f32 %v2155_v36, %v1387_v46 }
 0x496   : > { %v1395_v48 = vadd.f32 %v1393_v47, %v2617_v11 }
 0x498   : > { %1398 = vadd.xlane.f32.xlu1 %v1395_v48 }
 0x503   : > { %v1397_v53 = vpop.xlane.xlu0 %1396 }
 0x504   : > { %v1400_v54 = vmul.f32 0.03125, %v1397_v53 }
 0x506   : > { %v1402_v10 = vsub.f32 %v1394_v41, %v1400_v54  ;;  %v2059_v41 = vld [vmem:[%s2598_s13 + $0x8] sm:$0xff]  ;;  %v2159_v54 = vld [vmem:[%s699_s29] ss:$0 sm:$0xff] }
 0x507   : > { %1610 = vmatpush.bf16.msrb.mxu0 %v2059_v41 }
 0x508   : > { %v1404_v56 = vmul.f32 %v2746_v42, %v1402_v10 }
 0x50a   : > { %v1406_v35 = vmul.f32 %v1404_v56, %v1404_v56 }
 0x50b   : > { %v1399_v57 = vpop.xlane.xlu1 %1398  ;;  %1611 = vmatpush.bf16.msrb.mxu0 %v2058_v43 }
 0x50c   : > { %v1401_v11 = vmul.f32 0.03125, %v1399_v57  ;;  %1408 = vadd.xlane.f32.xlu2 %v1406_v35 }
 0x50e   : > { %v1403_v58 = vsub.f32 %v1395_v48, %v1401_v11 }
 0x510   : > { %v1405_v59 = vmul.f32 %v2746_v42, %v1403_v58 }
 0x512   : > { %v1407_v60 = vmul.f32 %v1405_v59, %v1405_v59 }
 0x514   : > { %1410 = vadd.xlane.f32.xlu0 %v1407_v60 }
 0x57f   : > { %v1409_v5 = vpop.xlane.xlu2 %1408 }
 0x580   : > { %v1412_v6 = vmul.f32 0.03125, %v1409_v5 }
 0x582   : > { %v1414_v7 = vadd.f32 1e-05, %v1412_v6 }
 0x584   : > { %2194 = vrsqrt.f32 %v1414_v7  ;;  %vm1422_vm4 = vweird.f32 %v1414_v7 }
 0x587   : > { %v1411_v9 = vpop.xlane.xlu0 %1410 }
 0x588   : > { %v1413_v12 = vmul.f32 0.03125, %v1411_v9 }
 0x58a   : > { %v2195_v14 = vpop.eup %2194  ;;  %v1415_v15 = vadd.f32 1e-05, %v1413_v12 }
 0x58b   : > { %v1417_v16 = vmul.f32 %v2195_v14, %v1414_v7  ;;  %vm1423_vm3 = vweird.f32 %v2195_v14 }
 0x58c   : > { %2196 = vrsqrt.f32 %v1415_v15  ;;  %vm1424_vm5 = vmor %vm1422_vm4, %vm1423_vm3  ;;  %vm1432_vm7 = vweird.f32 %v1415_v15 }
 0x58d   : > { %v1418_v18 = vmul.f32 %v2195_v14, %v1417_v16 }
 0x58f   : > { %v1419_v19 = vmul.f32 0.5, %v1418_v18 }
 0x591   : > { %v1420_v22 = vsub.f32 1.5, %v1419_v19  ;;  %v2160_v19 = vld [vmem:[%s702_s18] ss:$0 sm:$0xff]  ;;  %s2388_s18 = smov [#allocation8]  }
 0x592   : > { %v2197_v23 = vpop.eup %2196  ;;  %s1684_s30 = sshll.u32 %s2388_s18, 4  ;;  %s1685_s30 = int_to_ptr.vmem [resolvable:$true] %s1684_s30 }
 0x593   : > { %v1421_v24 = vmul.f32 %v2195_v14, %v1420_v22  ;;  %v1427_v25 = vmul.f32 %v2197_v23, %v1415_v15  ;;  %vm1433_vm6 = vweird.f32 %v2197_v23 }
 0x594   : > { %vm1434_vm8 = vmor %vm1432_vm7, %vm1433_vm6 }
 0x595   : > { %v1428_v21 = vmul.f32 %v2197_v23, %v1427_v25  ;;  %v1425_v26 = vsel %vm1424_vm5, %v2195_v14, %v1421_v24 }
 0x596   : > { %v1436_v30 = vmul.f32 %v1425_v26, %v1404_v56 }
 0x597   : > { %v1429_v27 = vmul.f32 0.5, %v1428_v21 }
 0x598   : > { %v1442_v50 = vmul.f32 %v2156_v31, %v1436_v30 }
 0x599   : > { %v1430_v29 = vsub.f32 1.5, %v1429_v27 }
 0x59a   : > { %v1448_v49 = vadd.f32 %v2157_v28, %v1442_v50 }
 0x59b   : > { %v1431_v32 = vmul.f32 %v2197_v23, %v1430_v29 }
 0x59d   : > { %v1435_v33 = vsel %vm1434_vm8, %v2197_v23, %v1431_v32  ;;  %v2161_v23 = vld [vmem:[%s705_s23] ss:$0 sm:$0xff]  ;;  %s2389_s23 = smov 128  }
 0x59e   : > { %v1437_v34 = vmul.f32 %v1435_v33, %v1405_v59 }
 0x5a0   : > { %v1443_v36 = vmul.f32 %v2156_v31, %v1437_v34 }
 0x5a2   : > { %v1449_v37 = vadd.f32 %v2157_v28, %v1443_v36 }
 0x5a4   : > { %v1450_v38 = vpack.c.bf16 %v1449_v37, %v1448_v49 }
 0x5a6   : > { %1527 = vmatmul.bf16.vlgmr.msrb.gmra.mxu3 %v1450_v38 }
 0x629   : > { %v1528_v44 = vpop.f32.mrf.mxu3 }
 0x62a   : > { %v1529_v46 = vadd.f32 %v2158_v45, %v1528_v44 }
 0x62c   : > { %v1533_v51 = vmax.f32 %v1529_v46, 0.0 }
 0x631   : > { %v1530_v47 = vpop.f32.mrf.mxu3 }
 0x632   : > { %v1531_v48 = vadd.f32 %v2158_v45, %v1530_v47 }
 0x634   : > { %v1534_v52 = vmax.f32 %v1531_v48, 0.0 }
 0x636   : > { %v1535_v53 = vpack.c.bf16 %v1534_v52, %v1533_v51 }
 0x638   : > { %1612 = vmatmul.bf16.vlgmr.msrb.gmra.mxu0 %v1535_v53 }
 0x6b5   : > { %v1613_v55 = vpop.f32.mrf.mxu0 }
 0x6b6   : > { %v1614_v10 = vadd.f32 %v2159_v54, %v1613_v55 }
 0x6b8   : > { %v1618_v56 = vadd.f32 %v1614_v10, %v1448_v49 }
 0x6ba   : > { %1620 = vadd.xlane.f32.xlu0 %v1618_v56 }
 0x6bd   : > { %v1615_v35 = vpop.f32.mrf.mxu0 }
 0x6be   : > { %v1616_v57 = vadd.f32 %v2159_v54, %v1615_v35 }
 0x6c0   : > { %v1619_v11 = vadd.f32 %v1616_v57, %v1449_v37 }
 0x6c2   : > { %1622 = vadd.xlane.f32.xlu1 %v1619_v11 }
 0x72d   : > { %v1621_v58 = vpop.xlane.xlu0 %1620 }
 0x72e   : > { %v1624_v59 = vmul.f32 0.03125, %v1621_v58 }
 0x730   : > { %v1626_v60 = vsub.f32 %v1618_v56, %v1624_v59 }
 0x732   : > { %v1628_v61 = vmul.f32 %v2746_v42, %v1626_v60 }
 0x734   : > { %v1630_v62 = vmul.f32 %v1628_v61, %v1628_v61 }
 0x735   : > { %v1623_v63 = vpop.xlane.xlu1 %1622 }
 0x736   : > { %v1625_v1 = vmul.f32 0.03125, %v1623_v63  ;;  %1632 = vadd.xlane.f32.xlu2 %v1630_v62 }
 0x738   : > { %v1627_v2 = vsub.f32 %v1619_v11, %v1625_v1 }
 0x73a   : > { %v1629_v3 = vmul.f32 %v2746_v42, %v1627_v2 }
 0x73c   : > { %v1631_v4 = vmul.f32 %v1629_v3, %v1629_v3 }
 0x73e   : > { %1634 = vadd.xlane.f32.xlu0 %v1631_v4 }
 0x7a9   : > { %v1633_v5 = vpop.xlane.xlu2 %1632 }
 0x7aa   : > { %v1636_v6 = vmul.f32 0.03125, %v1633_v5 }
 0x7ac   : > { %v1638_v0 = vadd.f32 1e-05, %v1636_v6 }
 0x7ae   : > { %2198 = vrsqrt.f32 %v1638_v0  ;;  %vm1646_vm10 = vweird.f32 %v1638_v0 }
 0x7b1   : > { %v1635_v7 = vpop.xlane.xlu0 %1634 }
 0x7b2   : > { %v1637_v8 = vmul.f32 0.03125, %v1635_v7 }
 0x7b4   : > { %v2199_v9 = vpop.eup %2198  ;;  %v1639_v12 = vadd.f32 1e-05, %v1637_v8 }
 0x7b5   : > { %v1641_v13 = vmul.f32 %v2199_v9, %v1638_v0  ;;  %vm1647_vm9 = vweird.f32 %v2199_v9 }
 0x7b6   : > { %2200 = vrsqrt.f32 %v1639_v12  ;;  %vm1648_vm11 = vmor %vm1646_vm10, %vm1647_vm9  ;;  %vm1656_vm13 = vweird.f32 %v1639_v12 }
 0x7b7   : > { %v1642_v14 = vmul.f32 %v2199_v9, %v1641_v13 }
 0x7b9   : > { %v1643_v15 = vmul.f32 0.5, %v1642_v14 }
 0x7bb   : > { %v1644_v16 = vsub.f32 1.5, %v1643_v15 }
 0x7bc   : > { %v2201_v17 = vpop.eup %2200 }
 0x7bd   : > { %v1645_v42 = vmul.f32 %v2199_v9, %v1644_v16  ;;  %v1651_v18 = vmul.f32 %v2201_v17, %v1639_v12  ;;  %vm1657_vm12 = vweird.f32 %v2201_v17 }
 0x7be   : > { %vm1658_vm14 = vmor %vm1656_vm13, %vm1657_vm12 }
 0x7bf   : > { %v1649_v20 = vsel %vm1648_vm11, %v2199_v9, %v1645_v42  ;;  %v1652_v22 = vmul.f32 %v2201_v17, %v1651_v18 }
 0x7c0   : > { %v1660_v24 = vmul.f32 %v1649_v20, %v1628_v61 }
 0x7c1   : > { %v1653_v25 = vmul.f32 0.5, %v1652_v22 }
 0x7c2   : > { %v1666_v21 = vmul.f32 %v2160_v19, %v1660_v24 }
 0x7c3   : > { %v1654_v26 = vsub.f32 1.5, %v1653_v25 }
 0x7c4   : > { %v1672_v27 = vadd.f32 %v2161_v23, %v1666_v21 }
 0x7c5   : > { %v1655_v29 = vmul.f32 %v2201_v17, %v1654_v26 }
 0x7c6   : > { %1674 = vst [vmem:[#allocation8] sm:$0xff] %v1672_v27 }
 0x7c7   : > { %v1659_v30 = vsel %vm1658_vm14, %v2201_v17, %v1655_v29 }
 0x7c8   : > { %v1661_v31 = vmul.f32 %v1659_v30, %v1629_v3 }
 0x7ca   : > { %v1667_v32 = vmul.f32 %v2160_v19, %v1661_v31 }
 0x7cc   : > { %v1673_v33 = vadd.f32 %v2161_v23, %v1667_v32 }
 0x7ce   : > { %1675 = vst [vmem:[#allocation8 + $0x8] sm:$0xff] %v1673_v33 }
 0x7cf   : > { %2073 = dma.vmem_to_hbm [thread:$0]  (%p2087_p1), %s1685_s30, 256, %s1687_s0, [#allocation4], %s2389_s23, %s2389_s23, %s2390_s1  }
 0x7d0   : > { %2353 = dma.done.wait (%p2087_p1), [#allocation4], 256  }
 0x7d1   : > { %2355 = vsyncadd (%p2087_p1), [#allocation4], 4294967040 }
 0x7d2 PF: > { %s2876_s15 = sld [smem:[#allocation14_spill]]  ;;  %s2881_s25 = smov %s2362_s26 }
 0x7d3   : > { %s2877_s24 = sld [smem:[#allocation12_spill]] }
 0x7d4   : > { %s2878_s27 = sld [smem:[#allocation16_spill]] }
 0x7d5   : > { %s2879_s28 = sld [smem:[#allocation13_spill]] }
 0x7d6   : > { %s2880_s29 = sld [smem:[#allocation15_spill]] }
 0x7d8   : > { %s30_s30 = sadd.s32 1, %s2876_s15  }
 0x7d9   : > { %p27_p2 = scmp.ge.s32.totalorder %s30_s30, 4   ;;  %s2882_s26 = smov %s2877_s24 }
 0x7db   :  { %29 = sbr.rel (!%p27_p2) target bundleno = 19 (0x13), region = 168 }
 0x7e0   :  { %1703 = vsyncpa [#allocation3], 1 }
 0x7e1   :  { %1705 = vsyncpa [#allocation3 + $0x1], 1 }
 0x7e2   :  { %1706 = vsyncpa [#allocation6], 1 }
 0x7e3   :  { %1708 = vsyncpa [#allocation6 + $0x1], 1 }
 0x7e4   :  { %1709 = vsyncpa [#allocation4], 1 }
 0x7e5   :  { %1711 = vsyncpa [#allocation4 + $0x1], 1 }

</bundles_post_ra>
